<compile_context>
chip_gen: v6e
topology: v6e:2x2x1
jax: 0.10.0
libtpu: 0.0.40
codegen_flags: <defaults>
</compile_context>

<pallas_src>
import jax
import jax.numpy as jnp
from jax.experimental import pallas as pl
from jax.experimental.pallas import tpu as pltpu


# ---------------------------------------------------------------------------
# helpers
# ---------------------------------------------------------------------------

def _next_power_of_2(x: int) -> int:
    return 1 if x == 0 else 2 ** ((x - 1).bit_length())


def _round_up(x: int, m: int) -> int:
    return -(-x // m) * m


def _device_kind() -> str:
    try:
        return jax.devices()[0].device_kind.lower()
    except Exception:
        return ""


def _vmem_capacity_bytes() -> int:
    """Physical VMEM per TensorCore for the current generation (safe fallbacks)."""
    try:
        cap = int(getattr(pltpu.get_tpu_info(), "vmem_capacity_bytes", 0))
        if cap > 0:
            return cap
    except Exception:
        pass
    kind = _device_kind()
    mib = 1024 * 1024
    if "v2" in kind or "v3" in kind:
        return 16 * mib
    if "7" in kind:                 # v7x: 64 MiB per TensorCore
        return 64 * mib
    return 128 * mib                # v4 / v5e / v5p / v6e


def _is_v7x() -> bool:
    return "7" in _device_kind()


def _resolve_compute_dtype(compute_dtype):
    """bf16 inputs (f32 accumulate) on v6e/v7x; f32 elsewhere (v5e has no bf16 VALU)."""
    if compute_dtype is not None:
        return jnp.dtype(compute_dtype)
    kind = _device_kind()
    if "v6" in kind or "7" in kind:
        return jnp.dtype(jnp.bfloat16)
    return jnp.dtype(jnp.float32)


def _pad_dims(C: int, M: int, compute_dtype):
    # Lane axis (last dim) must be a multiple of 128; the sublane (second-minor)
    # axis needs 8 for 32-bit data and 16 for 16-bit (bf16 packs 2 per sublane row).
    sub = 8 if jnp.dtype(compute_dtype).itemsize >= 4 else 16
    return _round_up(C, sub), _round_up(max(M, 1), 128)


def _tm_candidates(m_pad: int):
    cands = {t for t in (2048, 1536, 1024, 768, 512, 384, 256, 128) if m_pad % t == 0}
    if m_pad <= 2048:
        cands.add(m_pad)
    return sorted(cands, reverse=True)


def _select_tiles(N: int, C_pad: int, M_pad: int, in_bytes: int, budget: int):
    """Jointly pick (TN, TM) against a per-generation VMEM budget.

    Per-step VMEM model (conservative: weights counted double-buffered so the
    no-pipeline_mode fallback also fits):
      x   : 2 arrays * 2 buffers * TN*C*TM * in_bytes
      out : 2 arrays * 2 buffers * TN*C*TM * 4        (f32 outputs)
      acc : 2 live                TN*C*TM * 4         (f32 accumulators)
      w   : 2 arrays * 2 buffers * C*C*TM * in_bytes
    """
    tn_cands = sorted({d for d in range(1, min(N, 64) + 1) if N % d == 0},
                      reverse=True)
    tm_cands = _tm_candidates(M_pad)
    best, best_score = (1, tm_cands[-1]), -1
    for tn in tn_cands:
        for tm in tm_cands:
            xo_bytes = tn * C_pad * tm * (4 * in_bytes + 16 + 8)
            w_bytes = 4 * C_pad * C_pad * tm * in_bytes
            if xo_bytes + w_bytes <= budget:
                score = tn * tm
                if score > best_score:
                    best_score, best = score, (tn, tm)
    return best


# ---------------------------------------------------------------------------
# Pallas kernel: complex per-mode channel contraction
# ---------------------------------------------------------------------------
# TODO(synk): for production channel counts (C >= ~128) restructure this as a
# per-mode (N, Ci) @ (Ci, Co) lax.dot_general on the MXU; the broadcast-VPU loop
# below is the right regime only for small C.

def _complex_mix_kernel(xr_ref, xi_ref, wr_ref, wi_ref, or_ref, oi_ref):
    # xr/xi : (TN, Ci, TM)  fourier-coefficient real/imag tiles (f32 or bf16)
    # wr/wi : (Ci, Co, TM)  spectral weight tiles (f32 or bf16)
    # out   : (TN, Co, TM)  f32;  out[n,o,m] = sum_i x[n,i,m] * w[i,o,m]  (complex)
    ci = wr_ref.shape[0]
    acc_r = jnp.zeros(or_ref.shape, jnp.float32)
    acc_i = jnp.zeros(oi_ref.shape, jnp.float32)
    # Static unroll over the (small, static) input-channel axis; static ref slices
    # are views, and the broadcast along Co rides the XLU slot while VALU binds.
    for i in range(ci):
        xr_i = xr_ref[:, i, :][:, None, :]    # (TN, 1, TM)
        xi_i = xi_ref[:, i, :][:, None, :]
        wr_i = wr_ref[i][None, :, :]          # (1, Co, TM)
        wi_i = wi_ref[i][None, :, :]
        # Plain 4-mul complex product: products run in the input dtype
        # (bf16 on v6e/v7x), accumulation is always f32.
        acc_r = acc_r + (xr_i * wr_i - xi_i * wi_i)
        acc_i = acc_i + (xr_i * wi_i + xi_i * wr_i)
    or_ref[...] = acc_r
    oi_ref[...] = acc_i


def _complex_mix(xr, xi, wr, wi):
    # xr/xi: (2, N, C, M) activations, wr/wi: (2, C, C, M) weights, same dtype;
    # C sublane-padded, M lane-padded (multiple of 128).
    B, N, C, M = xr.shape
    assert wr.shape == (B, C, C, M) and xr.dtype == wr.dtype
    in_bytes = jnp.dtype(xr.dtype).itemsize

    cap = _vmem_capacity_bytes()
    vmem_limit = int(cap * 0.8)              # ~51 MiB on v7x, ~102 MiB on v5e/v6e
    tile_budget = int(vmem_limit * 0.85)     # headroom for Mosaic internal scratch
    tn, tm = _select_tiles(N, C, M, in_bytes, tile_budget)

    grid = (B, M // tm, N // tn)
    out_shape = (jax.ShapeDtypeStruct((B, N, C, M), jnp.float32),
                 jax.ShapeDtypeStruct((B, N, C, M), jnp.float32))

    def build(tuned: bool):
        # Innermost grid axis walks N; the weight block index is constant across it,
        # so the (C, C, TM) weight slab stays resident over all N tiles.
        x_spec = pl.BlockSpec((None, tn, C, tm), lambda b, mt, nt: (b, nt, 0, mt))
        o_spec = pl.BlockSpec((None, tn, C, tm), lambda b, mt, nt: (b, nt, 0, mt))
        w_kwargs = {"pipeline_mode": pl.Buffered(1)} if tuned else {}
        w_spec = pl.BlockSpec((None, C, C, tm), lambda b, mt, nt: (b, 0, 0, mt),
                              **w_kwargs)
        if tuned and _is_v7x():
            # B == 2 (pos/neg frequency block) maps 1:1 onto v7x's two TensorCores.
            sem = (pltpu.CORE_PARALLEL, pltpu.ARBITRARY, pltpu.ARBITRARY)
        else:
            sem = ("parallel", "parallel", "arbitrary")
        return pl.pallas_call(
            _complex_mix_kernel,
            out_shape=out_shape,
            grid=grid,
            in_specs=[x_spec, x_spec, w_spec, w_spec],
            out_specs=(o_spec, o_spec),
            compiler_params=pltpu.CompilerParams(
                dimension_semantics=sem,
                vmem_limit_bytes=vmem_limit,
            ),
        )

    try:
        # Tuned variant: single-buffered weight slabs + v7x 2-TensorCore split.
        return build(True)(xr, xi, wr, wi)
    except Exception:
        # TODO(synk): pl.Buffered(1) / CORE_PARALLEL unavailable on this JAX+TPU
        # combination; fall back to default double-buffered pipelining.
        return build(False)(xr, xi, wr, wi)


# ---------------------------------------------------------------------------
# weight preparation (call once at parameter-setup time)
# ---------------------------------------------------------------------------

def prepare_spectral_weights(weights_real, weights_imag, compute_dtype=None):
    """Pad/cast the static spectral weights once instead of inside every forward."""
    compute_dtype = _resolve_compute_dtype(compute_dtype)
    two, C, Co, nh, nw = weights_real.shape
    assert two == 2 and Co == C
    M = nh * nw
    C_pad, M_pad = _pad_dims(C, M, compute_dtype)
    wr = weights_real.reshape(2, C, C, M).astype(compute_dtype)
    wi = weights_imag.reshape(2, C, C, M).astype(compute_dtype)
    pad = ((0, 0), (0, C_pad - C), (0, C_pad - C), (0, M_pad - M))
    return jnp.pad(wr, pad), jnp.pad(wi, pad)


# ---------------------------------------------------------------------------
# forward pass (matches the PyTorch SpectralConv2d.forward semantics)
# ---------------------------------------------------------------------------

def spectral_conv2d(x, weights_real, weights_imag, n_hmodes, n_wmodes,
                    use_pallas=True, compute_dtype=None, prepared_weights=None):
    """x: (n_frames, C, H, W) f32; weights: (2, C, C, n_hmodes, n_wmodes) f32.

    compute_dtype=None -> auto (bf16 inputs / f32 accumulation on v6e/v7x, f32 on
    v5e).  prepared_weights: optional output of prepare_spectral_weights() with the
    same compute dtype, so static parameters are padded/cast once, not per call.
    """
    N, C, H, W = x.shape
    assert weights_real.shape == (2, C, C, n_hmodes, n_wmodes)
    pH, pW = _next_power_of_2(H), _next_power_of_2(W)
    # Guards the PyTorch module only satisfies implicitly.
    assert 2 * n_hmodes <= pH, "2*n_hmodes must fit the padded FFT height"
    assert n_wmodes <= pW // 2 + 1, "n_wmodes must fit the rfft width"
    assert n_hmodes <= H and n_wmodes <= W, "modes must fit the output grid"

    compute_dtype = _resolve_compute_dtype(compute_dtype)

    if (pH, pW) != (H, W):
        x_in = jnp.pad(x, ((0, 0), (0, 0), (0, pH - H), (0, pW - W)))
    else:
        x_in = x

    # TODO(synk): rfft2/irfft2 have no Pallas TPU primitive; they remain XLA ops.
    coeff = jnp.fft.rfft2(x_in.astype(jnp.float32), axes=(2, 3), norm="ortho")
    cr = jnp.real(coeff).astype(jnp.float32)
    ci = jnp.imag(coeff).astype(jnp.float32)

    M = n_hmodes * n_wmodes
    pos_r = cr[:, :, :n_hmodes, :n_wmodes]
    pos_i = ci[:, :, :n_hmodes, :n_wmodes]
    neg_r = cr[:, :, cr.shape[2] - n_hmodes:, :n_wmodes]
    neg_i = ci[:, :, ci.shape[2] - n_hmodes:, :n_wmodes]

    xr = jnp.stack([pos_r, neg_r], axis=0).reshape(2, N, C, M)
    xi = jnp.stack([pos_i, neg_i], axis=0).reshape(2, N, C, M)

    if use_pallas:
        C_pad, M_pad = _pad_dims(C, M, compute_dtype)
        if prepared_weights is None:
            prepared_weights = prepare_spectral_weights(
                weights_real, weights_imag, compute_dtype)
        wr_p, wi_p = prepared_weights
        assert wr_p.shape == (2, C_pad, C_pad, M_pad), "prepared weights mismatch"
        assert jnp.dtype(wr_p.dtype) == compute_dtype, "prepared weight dtype mismatch"

        xpad = ((0, 0), (0, 0), (0, C_pad - C), (0, M_pad - M))
        xr_p = jnp.pad(xr.astype(compute_dtype), xpad)
        xi_p = jnp.pad(xi.astype(compute_dtype), xpad)

        out_r_p, out_i_p = _complex_mix(xr_p, xi_p, wr_p, wi_p)
        out_r = out_r_p[:, :, :C, :M]
        out_i = out_i_p[:, :, :C, :M]
    else:
        # Pure-JAX f32 reference for the hot path (einsum 'bnim,biom->bnom').
        wr = weights_real.reshape(2, C, C, M).astype(jnp.float32)
        wi = weights_imag.reshape(2, C, C, M).astype(jnp.float32)
        out_r = (jnp.einsum("bnim,biom->bnom", xr, wr)
                 - jnp.einsum("bnim,biom->bnom", xi, wi))
        out_i = (jnp.einsum("bnim,biom->bnom", xr, wi)
                 + jnp.einsum("bnim,biom->bnom", xi, wr))

    out_r = out_r.reshape(2, N, C, n_hmodes, n_wmodes)
    out_i = out_i.reshape(2, N, C, n_hmodes, n_wmodes)

    # Build the half-spectrum (N, C, H, W//2 + 1) directly; irfft2(s=(H, W)) only
    # reads the first W//2 + 1 columns, identical to the PyTorch reference.
    Wf = W // 2 + 1
    n_w_used = min(n_wmodes, Wf)
    full_r = jnp.zeros((N, C, H, Wf), jnp.float32)
    full_i = jnp.zeros((N, C, H, Wf), jnp.float32)
    full_r = full_r.at[:, :, :n_hmodes, :n_w_used].set(out_r[0][..., :n_w_used])
    full_i = full_i.at[:, :, :n_hmodes, :n_w_used].set(out_i[0][..., :n_w_used])
    full_r = full_r.at[:, :, H - n_hmodes:, :n_w_used].set(out_r[1][..., :n_w_used])
    full_i = full_i.at[:, :, H - n_hmodes:, :n_w_used].set(out_i[1][..., :n_w_used])

    spec = full_r + 1j * full_i
    out = jnp.fft.irfft2(spec, s=(H, W), axes=(2, 3), norm="ortho")
    return out.astype(x.dtype)


if __name__ == "__main__":
    n_frames, embedding_dim, H, W = 2, 4, 16, 16
    n_hmodes, n_wmodes = 4, 4
    scale = 0.02

    key = jax.random.PRNGKey(0)
    k_x, k_wr, k_wi = jax.random.split(key, 3)
    x = jax.random.normal(k_x, (n_frames, embedding_dim, H, W), dtype=jnp.float32)
    weights_real = scale * jax.random.normal(
        k_wr, (2, embedding_dim, embedding_dim, n_hmodes, n_wmodes), dtype=jnp.float32)
    weights_imag = scale * jax.random.normal(
        k_wi, (2, embedding_dim, embedding_dim, n_hmodes, n_wmodes), dtype=jnp.float32)

    # Pure-JAX reference for the hot path.
    ref = spectral_conv2d(x, weights_real, weights_imag, n_hmodes, n_wmodes,
                          use_pallas=False)
    ref = jax.block_until_ready(ref)

    # 1) Full-precision Pallas path (all generations): tight numerical check.
    w_f32 = prepare_spectral_weights(weights_real, weights_imag, jnp.float32)
    out_f32 = spectral_conv2d(x, weights_real, weights_imag, n_hmodes, n_wmodes,
                              use_pallas=True, compute_dtype=jnp.float32,
                              prepared_weights=w_f32)
    out_f32 = jax.block_until_ready(out_f32)
    assert out_f32.shape == x.shape == (n_frames, embedding_dim, H, W)
    assert jnp.allclose(out_f32, ref, atol=1e-5, rtol=1e-5)

    # 2) Auto compute dtype (bf16 inputs / f32 accumulation on v6e/v7x).
    auto_dtype = _resolve_compute_dtype(None)
    w_auto = prepare_spectral_weights(weights_real, weights_imag, auto_dtype)
    out_auto = spectral_conv2d(x, weights_real, weights_imag, n_hmodes, n_wmodes,
                               use_pallas=True, compute_dtype=auto_dtype,
                               prepared_weights=w_auto)
    out_auto = jax.block_until_ready(out_auto)
    assert out_auto.shape == x.shape
    if auto_dtype == jnp.dtype(jnp.float32):
        assert jnp.allclose(out_auto, ref, atol=1e-5, rtol=1e-5)
    else:
        # bf16-input path: loose but bug-catching tolerance.
        assert jnp.allclose(out_auto, ref, atol=2e-2, rtol=1e-1)

    print("KERNEL_OK")
</pallas_src>

<mosaic_0001>
module attributes {stable_mosaic.version = 11 : i64} {
  func.func @_complex_mix_kernel(%arg0: i32, %arg1: i32, %arg2: i32, %arg3: memref<1x2x8x128xf32, #tpu.memory_space<vmem>>, %arg4: memref<1x2x8x128xf32, #tpu.memory_space<vmem>>, %arg5: memref<1x8x8x128xf32, #tpu.memory_space<vmem>>, %arg6: memref<1x8x8x128xf32, #tpu.memory_space<vmem>>, %arg7: memref<1x2x8x128xf32, #tpu.memory_space<vmem>>, %arg8: memref<1x2x8x128xf32, #tpu.memory_space<vmem>>) attributes {dimension_semantics = [#tpu.dimension_semantics<parallel>, #tpu.dimension_semantics<parallel>, #tpu.dimension_semantics<arbitrary>], iteration_bounds = array<i64: 2, 1, 1>, scalar_prefetch = 0 : i64, scratch_operands = 0 : i64, tpu.core_type = #tpu.core_type<tc>, window_params = [{transform_indices = @transform_0, window_bounds = array<i64: 1, 2, 8, 128>}, {transform_indices = @transform_1, window_bounds = array<i64: 1, 2, 8, 128>}, {pipeline_mode = #tpu.pipeline_mode<synchronous>, transform_indices = @transform_2, window_bounds = array<i64: 1, 8, 8, 128>}, {pipeline_mode = #tpu.pipeline_mode<synchronous>, transform_indices = @transform_3, window_bounds = array<i64: 1, 8, 8, 128>}, {transform_indices = @transform_4, window_bounds = array<i64: 1, 2, 8, 128>}, {transform_indices = @transform_5, window_bounds = array<i64: 1, 2, 8, 128>}]} {
    %cst = arith.constant 0.000000e+00 : f32
    %0 = vector.broadcast %cst : f32 to vector<2x8x128xf32>
    %cst_0 = arith.constant 0.000000e+00 : f32
    %1 = vector.broadcast %cst_0 : f32 to vector<2x8x128xf32>
    %c0 = arith.constant 0 : index
    %c0_1 = arith.constant 0 : index
    %c0_2 = arith.constant 0 : index
    %c0_3 = arith.constant 0 : index
    %2 = vector.load %arg3[%c0, %c0_1, %c0_2, %c0_3] : memref<1x2x8x128xf32, #tpu.memory_space<vmem>>, vector<1x2x1x128xf32>
    %3 = vector.shape_cast %2 : vector<1x2x1x128xf32> to vector<2x128xf32>
    %4 = vector.shape_cast %3 : vector<2x128xf32> to vector<2x1x128xf32>
    %c0_4 = arith.constant 0 : index
    %c0_5 = arith.constant 0 : index
    %c0_6 = arith.constant 0 : index
    %c0_7 = arith.constant 0 : index
    %5 = vector.load %arg4[%c0_4, %c0_5, %c0_6, %c0_7] : memref<1x2x8x128xf32, #tpu.memory_space<vmem>>, vector<1x2x1x128xf32>
    %6 = vector.shape_cast %5 : vector<1x2x1x128xf32> to vector<2x128xf32>
    %7 = vector.shape_cast %6 : vector<2x128xf32> to vector<2x1x128xf32>
    %c0_8 = arith.constant 0 : index
    %c0_9 = arith.constant 0 : index
    %c0_10 = arith.constant 0 : index
    %c0_11 = arith.constant 0 : index
    %8 = vector.load %arg5[%c0_8, %c0_9, %c0_10, %c0_11] : memref<1x8x8x128xf32, #tpu.memory_space<vmem>>, vector<1x1x8x128xf32>
    %9 = vector.shape_cast %8 : vector<1x1x8x128xf32> to vector<8x128xf32>
    %10 = vector.shape_cast %9 : vector<8x128xf32> to vector<1x8x128xf32>
    %c0_12 = arith.constant 0 : index
    %c0_13 = arith.constant 0 : index
    %c0_14 = arith.constant 0 : index
    %c0_15 = arith.constant 0 : index
    %11 = vector.load %arg6[%c0_12, %c0_13, %c0_14, %c0_15] : memref<1x8x8x128xf32, #tpu.memory_space<vmem>>, vector<1x1x8x128xf32>
    %12 = vector.shape_cast %11 : vector<1x1x8x128xf32> to vector<8x128xf32>
    %13 = vector.shape_cast %12 : vector<8x128xf32> to vector<1x8x128xf32>
    %14 = vector.broadcast %4 : vector<2x1x128xf32> to vector<2x8x128xf32>
    %15 = vector.broadcast %10 : vector<1x8x128xf32> to vector<2x8x128xf32>
    %16 = arith.mulf %14, %15 : vector<2x8x128xf32>
    %17 = vector.broadcast %7 : vector<2x1x128xf32> to vector<2x8x128xf32>
    %18 = vector.broadcast %13 : vector<1x8x128xf32> to vector<2x8x128xf32>
    %19 = arith.mulf %17, %18 : vector<2x8x128xf32>
    %20 = arith.subf %16, %19 : vector<2x8x128xf32>
    %21 = arith.addf %0, %20 : vector<2x8x128xf32>
    %22 = vector.broadcast %4 : vector<2x1x128xf32> to vector<2x8x128xf32>
    %23 = vector.broadcast %13 : vector<1x8x128xf32> to vector<2x8x128xf32>
    %24 = arith.mulf %22, %23 : vector<2x8x128xf32>
    %25 = vector.broadcast %7 : vector<2x1x128xf32> to vector<2x8x128xf32>
    %26 = vector.broadcast %10 : vector<1x8x128xf32> to vector<2x8x128xf32>
    %27 = arith.mulf %25, %26 : vector<2x8x128xf32>
    %28 = arith.addf %24, %27 : vector<2x8x128xf32>
    %29 = arith.addf %1, %28 : vector<2x8x128xf32>
    %c0_16 = arith.constant 0 : index
    %c0_17 = arith.constant 0 : index
    %c1 = arith.constant 1 : index
    %c0_18 = arith.constant 0 : index
    %30 = vector.load %arg3[%c0_16, %c0_17, %c1, %c0_18] : memref<1x2x8x128xf32, #tpu.memory_space<vmem>>, vector<1x2x1x128xf32>
    %31 = vector.shape_cast %30 : vector<1x2x1x128xf32> to vector<2x128xf32>
    %32 = vector.shape_cast %31 : vector<2x128xf32> to vector<2x1x128xf32>
    %c0_19 = arith.constant 0 : index
    %c0_20 = arith.constant 0 : index
    %c1_21 = arith.constant 1 : index
    %c0_22 = arith.constant 0 : index
    %33 = vector.load %arg4[%c0_19, %c0_20, %c1_21, %c0_22] : memref<1x2x8x128xf32, #tpu.memory_space<vmem>>, vector<1x2x1x128xf32>
    %34 = vector.shape_cast %33 : vector<1x2x1x128xf32> to vector<2x128xf32>
    %35 = vector.shape_cast %34 : vector<2x128xf32> to vector<2x1x128xf32>
    %c0_23 = arith.constant 0 : index
    %c1_24 = arith.constant 1 : index
    %c0_25 = arith.constant 0 : index
    %c0_26 = arith.constant 0 : index
    %36 = vector.load %arg5[%c0_23, %c1_24, %c0_25, %c0_26] : memref<1x8x8x128xf32, #tpu.memory_space<vmem>>, vector<1x1x8x128xf32>
    %37 = vector.shape_cast %36 : vector<1x1x8x128xf32> to vector<8x128xf32>
    %38 = vector.shape_cast %37 : vector<8x128xf32> to vector<1x8x128xf32>
    %c0_27 = arith.constant 0 : index
    %c1_28 = arith.constant 1 : index
    %c0_29 = arith.constant 0 : index
    %c0_30 = arith.constant 0 : index
    %39 = vector.load %arg6[%c0_27, %c1_28, %c0_29, %c0_30] : memref<1x8x8x128xf32, #tpu.memory_space<vmem>>, vector<1x1x8x128xf32>
    %40 = vector.shape_cast %39 : vector<1x1x8x128xf32> to vector<8x128xf32>
    %41 = vector.shape_cast %40 : vector<8x128xf32> to vector<1x8x128xf32>
    %42 = vector.broadcast %32 : vector<2x1x128xf32> to vector<2x8x128xf32>
    %43 = vector.broadcast %38 : vector<1x8x128xf32> to vector<2x8x128xf32>
    %44 = arith.mulf %42, %43 : vector<2x8x128xf32>
    %45 = vector.broadcast %35 : vector<2x1x128xf32> to vector<2x8x128xf32>
    %46 = vector.broadcast %41 : vector<1x8x128xf32> to vector<2x8x128xf32>
    %47 = arith.mulf %45, %46 : vector<2x8x128xf32>
    %48 = arith.subf %44, %47 : vector<2x8x128xf32>
    %49 = arith.addf %21, %48 : vector<2x8x128xf32>
    %50 = vector.broadcast %32 : vector<2x1x128xf32> to vector<2x8x128xf32>
    %51 = vector.broadcast %41 : vector<1x8x128xf32> to vector<2x8x128xf32>
    %52 = arith.mulf %50, %51 : vector<2x8x128xf32>
    %53 = vector.broadcast %35 : vector<2x1x128xf32> to vector<2x8x128xf32>
    %54 = vector.broadcast %38 : vector<1x8x128xf32> to vector<2x8x128xf32>
    %55 = arith.mulf %53, %54 : vector<2x8x128xf32>
    %56 = arith.addf %52, %55 : vector<2x8x128xf32>
    %57 = arith.addf %29, %56 : vector<2x8x128xf32>
    %c0_31 = arith.constant 0 : index
    %c0_32 = arith.constant 0 : index
    %c2 = arith.constant 2 : index
    %c0_33 = arith.constant 0 : index
    %58 = vector.load %arg3[%c0_31, %c0_32, %c2, %c0_33] : memref<1x2x8x128xf32, #tpu.memory_space<vmem>>, vector<1x2x1x128xf32>
    %59 = vector.shape_cast %58 : vector<1x2x1x128xf32> to vector<2x128xf32>
    %60 = vector.shape_cast %59 : vector<2x128xf32> to vector<2x1x128xf32>
    %c0_34 = arith.constant 0 : index
    %c0_35 = arith.constant 0 : index
    %c2_36 = arith.constant 2 : index
    %c0_37 = arith.constant 0 : index
    %61 = vector.load %arg4[%c0_34, %c0_35, %c2_36, %c0_37] : memref<1x2x8x128xf32, #tpu.memory_space<vmem>>, vector<1x2x1x128xf32>
    %62 = vector.shape_cast %61 : vector<1x2x1x128xf32> to vector<2x128xf32>
    %63 = vector.shape_cast %62 : vector<2x128xf32> to vector<2x1x128xf32>
    %c0_38 = arith.constant 0 : index
    %c2_39 = arith.constant 2 : index
    %c0_40 = arith.constant 0 : index
    %c0_41 = arith.constant 0 : index
    %64 = vector.load %arg5[%c0_38, %c2_39, %c0_40, %c0_41] : memref<1x8x8x128xf32, #tpu.memory_space<vmem>>, vector<1x1x8x128xf32>
    %65 = vector.shape_cast %64 : vector<1x1x8x128xf32> to vector<8x128xf32>
    %66 = vector.shape_cast %65 : vector<8x128xf32> to vector<1x8x128xf32>
    %c0_42 = arith.constant 0 : index
    %c2_43 = arith.constant 2 : index
    %c0_44 = arith.constant 0 : index
    %c0_45 = arith.constant 0 : index
    %67 = vector.load %arg6[%c0_42, %c2_43, %c0_44, %c0_45] : memref<1x8x8x128xf32, #tpu.memory_space<vmem>>, vector<1x1x8x128xf32>
    %68 = vector.shape_cast %67 : vector<1x1x8x128xf32> to vector<8x128xf32>
    %69 = vector.shape_cast %68 : vector<8x128xf32> to vector<1x8x128xf32>
    %70 = vector.broadcast %60 : vector<2x1x128xf32> to vector<2x8x128xf32>
    %71 = vector.broadcast %66 : vector<1x8x128xf32> to vector<2x8x128xf32>
    %72 = arith.mulf %70, %71 : vector<2x8x128xf32>
    %73 = vector.broadcast %63 : vector<2x1x128xf32> to vector<2x8x128xf32>
    %74 = vector.broadcast %69 : vector<1x8x128xf32> to vector<2x8x128xf32>
    %75 = arith.mulf %73, %74 : vector<2x8x128xf32>
    %76 = arith.subf %72, %75 : vector<2x8x128xf32>
    %77 = arith.addf %49, %76 : vector<2x8x128xf32>
    %78 = vector.broadcast %60 : vector<2x1x128xf32> to vector<2x8x128xf32>
    %79 = vector.broadcast %69 : vector<1x8x128xf32> to vector<2x8x128xf32>
    %80 = arith.mulf %78, %79 : vector<2x8x128xf32>
    %81 = vector.broadcast %63 : vector<2x1x128xf32> to vector<2x8x128xf32>
    %82 = vector.broadcast %66 : vector<1x8x128xf32> to vector<2x8x128xf32>
    %83 = arith.mulf %81, %82 : vector<2x8x128xf32>
    %84 = arith.addf %80, %83 : vector<2x8x128xf32>
    %85 = arith.addf %57, %84 : vector<2x8x128xf32>
    %c0_46 = arith.constant 0 : index
    %c0_47 = arith.constant 0 : index
    %c3 = arith.constant 3 : index
    %c0_48 = arith.constant 0 : index
    %86 = vector.load %arg3[%c0_46, %c0_47, %c3, %c0_48] : memref<1x2x8x128xf32, #tpu.memory_space<vmem>>, vector<1x2x1x128xf32>
    %87 = vector.shape_cast %86 : vector<1x2x1x128xf32> to vector<2x128xf32>
    %88 = vector.shape_cast %87 : vector<2x128xf32> to vector<2x1x128xf32>
    %c0_49 = arith.constant 0 : index
    %c0_50 = arith.constant 0 : index
    %c3_51 = arith.constant 3 : index
    %c0_52 = arith.constant 0 : index
    %89 = vector.load %arg4[%c0_49, %c0_50, %c3_51, %c0_52] : memref<1x2x8x128xf32, #tpu.memory_space<vmem>>, vector<1x2x1x128xf32>
    %90 = vector.shape_cast %89 : vector<1x2x1x128xf32> to vector<2x128xf32>
    %91 = vector.shape_cast %90 : vector<2x128xf32> to vector<2x1x128xf32>
    %c0_53 = arith.constant 0 : index
    %c3_54 = arith.constant 3 : index
    %c0_55 = arith.constant 0 : index
    %c0_56 = arith.constant 0 : index
    %92 = vector.load %arg5[%c0_53, %c3_54, %c0_55, %c0_56] : memref<1x8x8x128xf32, #tpu.memory_space<vmem>>, vector<1x1x8x128xf32>
    %93 = vector.shape_cast %92 : vector<1x1x8x128xf32> to vector<8x128xf32>
    %94 = vector.shape_cast %93 : vector<8x128xf32> to vector<1x8x128xf32>
    %c0_57 = arith.constant 0 : index
    %c3_58 = arith.constant 3 : index
    %c0_59 = arith.constant 0 : index
    %c0_60 = arith.constant 0 : index
    %95 = vector.load %arg6[%c0_57, %c3_58, %c0_59, %c0_60] : memref<1x8x8x128xf32, #tpu.memory_space<vmem>>, vector<1x1x8x128xf32>
    %96 = vector.shape_cast %95 : vector<1x1x8x128xf32> to vector<8x128xf32>
    %97 = vector.shape_cast %96 : vector<8x128xf32> to vector<1x8x128xf32>
    %98 = vector.broadcast %88 : vector<2x1x128xf32> to vector<2x8x128xf32>
    %99 = vector.broadcast %94 : vector<1x8x128xf32> to vector<2x8x128xf32>
    %100 = arith.mulf %98, %99 : vector<2x8x128xf32>
    %101 = vector.broadcast %91 : vector<2x1x128xf32> to vector<2x8x128xf32>
    %102 = vector.broadcast %97 : vector<1x8x128xf32> to vector<2x8x128xf32>
    %103 = arith.mulf %101, %102 : vector<2x8x128xf32>
    %104 = arith.subf %100, %103 : vector<2x8x128xf32>
    %105 = arith.addf %77, %104 : vector<2x8x128xf32>
    %106 = vector.broadcast %88 : vector<2x1x128xf32> to vector<2x8x128xf32>
    %107 = vector.broadcast %97 : vector<1x8x128xf32> to vector<2x8x128xf32>
    %108 = arith.mulf %106, %107 : vector<2x8x128xf32>
    %109 = vector.broadcast %91 : vector<2x1x128xf32> to vector<2x8x128xf32>
    %110 = vector.broadcast %94 : vector<1x8x128xf32> to vector<2x8x128xf32>
    %111 = arith.mulf %109, %110 : vector<2x8x128xf32>
    %112 = arith.addf %108, %111 : vector<2x8x128xf32>
    %113 = arith.addf %85, %112 : vector<2x8x128xf32>
    %c0_61 = arith.constant 0 : index
    %c0_62 = arith.constant 0 : index
    %c4 = arith.constant 4 : index
    %c0_63 = arith.constant 0 : index
    %114 = vector.load %arg3[%c0_61, %c0_62, %c4, %c0_63] : memref<1x2x8x128xf32, #tpu.memory_space<vmem>>, vector<1x2x1x128xf32>
    %115 = vector.shape_cast %114 : vector<1x2x1x128xf32> to vector<2x128xf32>
    %116 = vector.shape_cast %115 : vector<2x128xf32> to vector<2x1x128xf32>
    %c0_64 = arith.constant 0 : index
    %c0_65 = arith.constant 0 : index
    %c4_66 = arith.constant 4 : index
    %c0_67 = arith.constant 0 : index
    %117 = vector.load %arg4[%c0_64, %c0_65, %c4_66, %c0_67] : memref<1x2x8x128xf32, #tpu.memory_space<vmem>>, vector<1x2x1x128xf32>
    %118 = vector.shape_cast %117 : vector<1x2x1x128xf32> to vector<2x128xf32>
    %119 = vector.shape_cast %118 : vector<2x128xf32> to vector<2x1x128xf32>
    %c0_68 = arith.constant 0 : index
    %c4_69 = arith.constant 4 : index
    %c0_70 = arith.constant 0 : index
    %c0_71 = arith.constant 0 : index
    %120 = vector.load %arg5[%c0_68, %c4_69, %c0_70, %c0_71] : memref<1x8x8x128xf32, #tpu.memory_space<vmem>>, vector<1x1x8x128xf32>
    %121 = vector.shape_cast %120 : vector<1x1x8x128xf32> to vector<8x128xf32>
    %122 = vector.shape_cast %121 : vector<8x128xf32> to vector<1x8x128xf32>
    %c0_72 = arith.constant 0 : index
    %c4_73 = arith.constant 4 : index
    %c0_74 = arith.constant 0 : index
    %c0_75 = arith.constant 0 : index
    %123 = vector.load %arg6[%c0_72, %c4_73, %c0_74, %c0_75] : memref<1x8x8x128xf32, #tpu.memory_space<vmem>>, vector<1x1x8x128xf32>
    %124 = vector.shape_cast %123 : vector<1x1x8x128xf32> to vector<8x128xf32>
    %125 = vector.shape_cast %124 : vector<8x128xf32> to vector<1x8x128xf32>
    %126 = vector.broadcast %116 : vector<2x1x128xf32> to vector<2x8x128xf32>
    %127 = vector.broadcast %122 : vector<1x8x128xf32> to vector<2x8x128xf32>
    %128 = arith.mulf %126, %127 : vector<2x8x128xf32>
    %129 = vector.broadcast %119 : vector<2x1x128xf32> to vector<2x8x128xf32>
    %130 = vector.broadcast %125 : vector<1x8x128xf32> to vector<2x8x128xf32>
    %131 = arith.mulf %129, %130 : vector<2x8x128xf32>
    %132 = arith.subf %128, %131 : vector<2x8x128xf32>
    %133 = arith.addf %105, %132 : vector<2x8x128xf32>
    %134 = vector.broadcast %116 : vector<2x1x128xf32> to vector<2x8x128xf32>
    %135 = vector.broadcast %125 : vector<1x8x128xf32> to vector<2x8x128xf32>
    %136 = arith.mulf %134, %135 : vector<2x8x128xf32>
    %137 = vector.broadcast %119 : vector<2x1x128xf32> to vector<2x8x128xf32>
    %138 = vector.broadcast %122 : vector<1x8x128xf32> to vector<2x8x128xf32>
    %139 = arith.mulf %137, %138 : vector<2x8x128xf32>
    %140 = arith.addf %136, %139 : vector<2x8x128xf32>
    %141 = arith.addf %113, %140 : vector<2x8x128xf32>
    %c0_76 = arith.constant 0 : index
    %c0_77 = arith.constant 0 : index
    %c5 = arith.constant 5 : index
    %c0_78 = arith.constant 0 : index
    %142 = vector.load %arg3[%c0_76, %c0_77, %c5, %c0_78] : memref<1x2x8x128xf32, #tpu.memory_space<vmem>>, vector<1x2x1x128xf32>
    %143 = vector.shape_cast %142 : vector<1x2x1x128xf32> to vector<2x128xf32>
    %144 = vector.shape_cast %143 : vector<2x128xf32> to vector<2x1x128xf32>
    %c0_79 = arith.constant 0 : index
    %c0_80 = arith.constant 0 : index
    %c5_81 = arith.constant 5 : index
    %c0_82 = arith.constant 0 : index
    %145 = vector.load %arg4[%c0_79, %c0_80, %c5_81, %c0_82] : memref<1x2x8x128xf32, #tpu.memory_space<vmem>>, vector<1x2x1x128xf32>
    %146 = vector.shape_cast %145 : vector<1x2x1x128xf32> to vector<2x128xf32>
    %147 = vector.shape_cast %146 : vector<2x128xf32> to vector<2x1x128xf32>
    %c0_83 = arith.constant 0 : index
    %c5_84 = arith.constant 5 : index
    %c0_85 = arith.constant 0 : index
    %c0_86 = arith.constant 0 : index
    %148 = vector.load %arg5[%c0_83, %c5_84, %c0_85, %c0_86] : memref<1x8x8x128xf32, #tpu.memory_space<vmem>>, vector<1x1x8x128xf32>
    %149 = vector.shape_cast %148 : vector<1x1x8x128xf32> to vector<8x128xf32>
    %150 = vector.shape_cast %149 : vector<8x128xf32> to vector<1x8x128xf32>
    %c0_87 = arith.constant 0 : index
    %c5_88 = arith.constant 5 : index
    %c0_89 = arith.constant 0 : index
    %c0_90 = arith.constant 0 : index
    %151 = vector.load %arg6[%c0_87, %c5_88, %c0_89, %c0_90] : memref<1x8x8x128xf32, #tpu.memory_space<vmem>>, vector<1x1x8x128xf32>
    %152 = vector.shape_cast %151 : vector<1x1x8x128xf32> to vector<8x128xf32>
    %153 = vector.shape_cast %152 : vector<8x128xf32> to vector<1x8x128xf32>
    %154 = vector.broadcast %144 : vector<2x1x128xf32> to vector<2x8x128xf32>
    %155 = vector.broadcast %150 : vector<1x8x128xf32> to vector<2x8x128xf32>
    %156 = arith.mulf %154, %155 : vector<2x8x128xf32>
    %157 = vector.broadcast %147 : vector<2x1x128xf32> to vector<2x8x128xf32>
    %158 = vector.broadcast %153 : vector<1x8x128xf32> to vector<2x8x128xf32>
    %159 = arith.mulf %157, %158 : vector<2x8x128xf32>
    %160 = arith.subf %156, %159 : vector<2x8x128xf32>
    %161 = arith.addf %133, %160 : vector<2x8x128xf32>
    %162 = vector.broadcast %144 : vector<2x1x128xf32> to vector<2x8x128xf32>
    %163 = vector.broadcast %153 : vector<1x8x128xf32> to vector<2x8x128xf32>
    %164 = arith.mulf %162, %163 : vector<2x8x128xf32>
    %165 = vector.broadcast %147 : vector<2x1x128xf32> to vector<2x8x128xf32>
    %166 = vector.broadcast %150 : vector<1x8x128xf32> to vector<2x8x128xf32>
    %167 = arith.mulf %165, %166 : vector<2x8x128xf32>
    %168 = arith.addf %164, %167 : vector<2x8x128xf32>
    %169 = arith.addf %141, %168 : vector<2x8x128xf32>
    %c0_91 = arith.constant 0 : index
    %c0_92 = arith.constant 0 : index
    %c6 = arith.constant 6 : index
    %c0_93 = arith.constant 0 : index
    %170 = vector.load %arg3[%c0_91, %c0_92, %c6, %c0_93] : memref<1x2x8x128xf32, #tpu.memory_space<vmem>>, vector<1x2x1x128xf32>
    %171 = vector.shape_cast %170 : vector<1x2x1x128xf32> to vector<2x128xf32>
    %172 = vector.shape_cast %171 : vector<2x128xf32> to vector<2x1x128xf32>
    %c0_94 = arith.constant 0 : index
    %c0_95 = arith.constant 0 : index
    %c6_96 = arith.constant 6 : index
    %c0_97 = arith.constant 0 : index
    %173 = vector.load %arg4[%c0_94, %c0_95, %c6_96, %c0_97] : memref<1x2x8x128xf32, #tpu.memory_space<vmem>>, vector<1x2x1x128xf32>
    %174 = vector.shape_cast %173 : vector<1x2x1x128xf32> to vector<2x128xf32>
    %175 = vector.shape_cast %174 : vector<2x128xf32> to vector<2x1x128xf32>
    %c0_98 = arith.constant 0 : index
    %c6_99 = arith.constant 6 : index
    %c0_100 = arith.constant 0 : index
    %c0_101 = arith.constant 0 : index
    %176 = vector.load %arg5[%c0_98, %c6_99, %c0_100, %c0_101] : memref<1x8x8x128xf32, #tpu.memory_space<vmem>>, vector<1x1x8x128xf32>
    %177 = vector.shape_cast %176 : vector<1x1x8x128xf32> to vector<8x128xf32>
    %178 = vector.shape_cast %177 : vector<8x128xf32> to vector<1x8x128xf32>
    %c0_102 = arith.constant 0 : index
    %c6_103 = arith.constant 6 : index
    %c0_104 = arith.constant 0 : index
    %c0_105 = arith.constant 0 : index
    %179 = vector.load %arg6[%c0_102, %c6_103, %c0_104, %c0_105] : memref<1x8x8x128xf32, #tpu.memory_space<vmem>>, vector<1x1x8x128xf32>
    %180 = vector.shape_cast %179 : vector<1x1x8x128xf32> to vector<8x128xf32>
    %181 = vector.shape_cast %180 : vector<8x128xf32> to vector<1x8x128xf32>
    %182 = vector.broadcast %172 : vector<2x1x128xf32> to vector<2x8x128xf32>
    %183 = vector.broadcast %178 : vector<1x8x128xf32> to vector<2x8x128xf32>
    %184 = arith.mulf %182, %183 : vector<2x8x128xf32>
    %185 = vector.broadcast %175 : vector<2x1x128xf32> to vector<2x8x128xf32>
    %186 = vector.broadcast %181 : vector<1x8x128xf32> to vector<2x8x128xf32>
    %187 = arith.mulf %185, %186 : vector<2x8x128xf32>
    %188 = arith.subf %184, %187 : vector<2x8x128xf32>
    %189 = arith.addf %161, %188 : vector<2x8x128xf32>
    %190 = vector.broadcast %172 : vector<2x1x128xf32> to vector<2x8x128xf32>
    %191 = vector.broadcast %181 : vector<1x8x128xf32> to vector<2x8x128xf32>
    %192 = arith.mulf %190, %191 : vector<2x8x128xf32>
    %193 = vector.broadcast %175 : vector<2x1x128xf32> to vector<2x8x128xf32>
    %194 = vector.broadcast %178 : vector<1x8x128xf32> to vector<2x8x128xf32>
    %195 = arith.mulf %193, %194 : vector<2x8x128xf32>
    %196 = arith.addf %192, %195 : vector<2x8x128xf32>
    %197 = arith.addf %169, %196 : vector<2x8x128xf32>
    %c0_106 = arith.constant 0 : index
    %c0_107 = arith.constant 0 : index
    %c7 = arith.constant 7 : index
    %c0_108 = arith.constant 0 : index
    %198 = vector.load %arg3[%c0_106, %c0_107, %c7, %c0_108] : memref<1x2x8x128xf32, #tpu.memory_space<vmem>>, vector<1x2x1x128xf32>
    %199 = vector.shape_cast %198 : vector<1x2x1x128xf32> to vector<2x128xf32>
    %200 = vector.shape_cast %199 : vector<2x128xf32> to vector<2x1x128xf32>
    %c0_109 = arith.constant 0 : index
    %c0_110 = arith.constant 0 : index
    %c7_111 = arith.constant 7 : index
    %c0_112 = arith.constant 0 : index
    %201 = vector.load %arg4[%c0_109, %c0_110, %c7_111, %c0_112] : memref<1x2x8x128xf32, #tpu.memory_space<vmem>>, vector<1x2x1x128xf32>
    %202 = vector.shape_cast %201 : vector<1x2x1x128xf32> to vector<2x128xf32>
    %203 = vector.shape_cast %202 : vector<2x128xf32> to vector<2x1x128xf32>
    %c0_113 = arith.constant 0 : index
    %c7_114 = arith.constant 7 : index
    %c0_115 = arith.constant 0 : index
    %c0_116 = arith.constant 0 : index
    %204 = vector.load %arg5[%c0_113, %c7_114, %c0_115, %c0_116] : memref<1x8x8x128xf32, #tpu.memory_space<vmem>>, vector<1x1x8x128xf32>
    %205 = vector.shape_cast %204 : vector<1x1x8x128xf32> to vector<8x128xf32>
    %206 = vector.shape_cast %205 : vector<8x128xf32> to vector<1x8x128xf32>
    %c0_117 = arith.constant 0 : index
    %c7_118 = arith.constant 7 : index
    %c0_119 = arith.constant 0 : index
    %c0_120 = arith.constant 0 : index
    %207 = vector.load %arg6[%c0_117, %c7_118, %c0_119, %c0_120] : memref<1x8x8x128xf32, #tpu.memory_space<vmem>>, vector<1x1x8x128xf32>
    %208 = vector.shape_cast %207 : vector<1x1x8x128xf32> to vector<8x128xf32>
    %209 = vector.shape_cast %208 : vector<8x128xf32> to vector<1x8x128xf32>
    %210 = vector.broadcast %200 : vector<2x1x128xf32> to vector<2x8x128xf32>
    %211 = vector.broadcast %206 : vector<1x8x128xf32> to vector<2x8x128xf32>
    %212 = arith.mulf %210, %211 : vector<2x8x128xf32>
    %213 = vector.broadcast %203 : vector<2x1x128xf32> to vector<2x8x128xf32>
    %214 = vector.broadcast %209 : vector<1x8x128xf32> to vector<2x8x128xf32>
    %215 = arith.mulf %213, %214 : vector<2x8x128xf32>
    %216 = arith.subf %212, %215 : vector<2x8x128xf32>
    %217 = arith.addf %189, %216 : vector<2x8x128xf32>
    %218 = vector.broadcast %200 : vector<2x1x128xf32> to vector<2x8x128xf32>
    %219 = vector.broadcast %209 : vector<1x8x128xf32> to vector<2x8x128xf32>
    %220 = arith.mulf %218, %219 : vector<2x8x128xf32>
    %221 = vector.broadcast %203 : vector<2x1x128xf32> to vector<2x8x128xf32>
    %222 = vector.broadcast %206 : vector<1x8x128xf32> to vector<2x8x128xf32>
    %223 = arith.mulf %221, %222 : vector<2x8x128xf32>
    %224 = arith.addf %220, %223 : vector<2x8x128xf32>
    %225 = arith.addf %197, %224 : vector<2x8x128xf32>
    %c0_121 = arith.constant 0 : index
    %c0_122 = arith.constant 0 : index
    %c0_123 = arith.constant 0 : index
    %c0_124 = arith.constant 0 : index
    %226 = vector.load %arg7[%c0_121, %c0_122, %c0_123, %c0_124] : memref<1x2x8x128xf32, #tpu.memory_space<vmem>>, vector<1x2x8x128xf32>
    %227 = vector.shape_cast %226 : vector<1x2x8x128xf32> to vector<2x8x128xf32>
    %228 = vector.shape_cast %217 : vector<2x8x128xf32> to vector<1x2x8x128xf32>
    tpu.vector_store %arg7[%c0_121, %c0_122, %c0_123, %c0_124], %228 {strides = array<i32>} : memref<1x2x8x128xf32, #tpu.memory_space<vmem>>, vector<1x2x8x128xf32>,
    %c0_125 = arith.constant 0 : index
    %c0_126 = arith.constant 0 : index
    %c0_127 = arith.constant 0 : index
    %c0_128 = arith.constant 0 : index
    %229 = vector.load %arg8[%c0_125, %c0_126, %c0_127, %c0_128] : memref<1x2x8x128xf32, #tpu.memory_space<vmem>>, vector<1x2x8x128xf32>
    %230 = vector.shape_cast %229 : vector<1x2x8x128xf32> to vector<2x8x128xf32>
    %231 = vector.shape_cast %225 : vector<2x8x128xf32> to vector<1x2x8x128xf32>
    tpu.vector_store %arg8[%c0_125, %c0_126, %c0_127, %c0_128], %231 {strides = array<i32>} : memref<1x2x8x128xf32, #tpu.memory_space<vmem>>, vector<1x2x8x128xf32>,
    return
  }
  func.func @transform_0(%arg0: i32, %arg1: i32, %arg2: i32) -> (i32, i32, i32, i32) {
    %c0_i32 = arith.constant 0 : i32
    %c0_i32_0 = arith.constant 0 : i32
    return %arg0, %arg2, %c0_i32, %arg1 : i32, i32, i32, i32
  }
  func.func @transform_1(%arg0: i32, %arg1: i32, %arg2: i32) -> (i32, i32, i32, i32) {
    %c0_i32 = arith.constant 0 : i32
    %c0_i32_0 = arith.constant 0 : i32
    return %arg0, %arg2, %c0_i32, %arg1 : i32, i32, i32, i32
  }
  func.func @transform_2(%arg0: i32, %arg1: i32, %arg2: i32) -> (i32, i32, i32, i32) {
    %c0_i32 = arith.constant 0 : i32
    %c0_i32_0 = arith.constant 0 : i32
    %c0_i32_1 = arith.constant 0 : i32
    return %arg0, %c0_i32, %c0_i32_0, %arg1 : i32, i32, i32, i32
  }
  func.func @transform_3(%arg0: i32, %arg1: i32, %arg2: i32) -> (i32, i32, i32, i32) {
    %c0_i32 = arith.constant 0 : i32
    %c0_i32_0 = arith.constant 0 : i32
    %c0_i32_1 = arith.constant 0 : i32
    return %arg0, %c0_i32, %c0_i32_0, %arg1 : i32, i32, i32, i32
  }
  func.func @transform_4(%arg0: i32, %arg1: i32, %arg2: i32) -> (i32, i32, i32, i32) {
    %c0_i32 = arith.constant 0 : i32
    %c0_i32_0 = arith.constant 0 : i32
    return %arg0, %arg2, %c0_i32, %arg1 : i32, i32, i32, i32
  }
  func.func @transform_5(%arg0: i32, %arg1: i32, %arg2: i32) -> (i32, i32, i32, i32) {
    %c0_i32 = arith.constant 0 : i32
    %c0_i32_0 = arith.constant 0 : i32
    return %arg0, %arg2, %c0_i32, %arg1 : i32, i32, i32, i32
  }
}

module attributes {stable_mosaic.version = 11 : i64} {
  func.func @_complex_mix_kernel(%arg0: i32, %arg1: i32, %arg2: i32, %arg3: memref<1x2x8x128xf32, #tpu.memory_space<vmem>>, %arg4: memref<1x2x8x128xf32, #tpu.memory_space<vmem>>, %arg5: memref<1x8x8x128xf32, #tpu.memory_space<vmem>>, %arg6: memref<1x8x8x128xf32, #tpu.memory_space<vmem>>, %arg7: memref<1x2x8x128xf32, #tpu.memory_space<vmem>>, %arg8: memref<1x2x8x128xf32, #tpu.memory_space<vmem>>) attributes {dimension_semantics = [#tpu.dimension_semantics<parallel>, #tpu.dimension_semantics<parallel>, #tpu.dimension_semantics<arbitrary>], iteration_bounds = array<i64: 2, 1, 1>, scalar_prefetch = 0 : i64, scratch_operands = 0 : i64, tpu.core_type = #tpu.core_type<tc>, window_params = [{transform_indices = @transform_0, window_bounds = array<i64: 1, 2, 8, 128>}, {transform_indices = @transform_1, window_bounds = array<i64: 1, 2, 8, 128>}, {transform_indices = @transform_2, window_bounds = array<i64: 1, 8, 8, 128>}, {transform_indices = @transform_3, window_bounds = array<i64: 1, 8, 8, 128>}, {transform_indices = @transform_4, window_bounds = array<i64: 1, 2, 8, 128>}, {transform_indices = @transform_5, window_bounds = array<i64: 1, 2, 8, 128>}]} {
    %cst = arith.constant 0.000000e+00 : f32
    %0 = vector.broadcast %cst : f32 to vector<2x8x128xf32>
    %cst_0 = arith.constant 0.000000e+00 : f32
    %1 = vector.broadcast %cst_0 : f32 to vector<2x8x128xf32>
    %c0 = arith.constant 0 : index
    %c0_1 = arith.constant 0 : index
    %c0_2 = arith.constant 0 : index
    %c0_3 = arith.constant 0 : index
    %2 = vector.load %arg3[%c0, %c0_1, %c0_2, %c0_3] : memref<1x2x8x128xf32, #tpu.memory_space<vmem>>, vector<1x2x1x128xf32>
    %3 = vector.shape_cast %2 : vector<1x2x1x128xf32> to vector<2x128xf32>
    %4 = vector.shape_cast %3 : vector<2x128xf32> to vector<2x1x128xf32>
    %c0_4 = arith.constant 0 : index
    %c0_5 = arith.constant 0 : index
    %c0_6 = arith.constant 0 : index
    %c0_7 = arith.constant 0 : index
    %5 = vector.load %arg4[%c0_4, %c0_5, %c0_6, %c0_7] : memref<1x2x8x128xf32, #tpu.memory_space<vmem>>, vector<1x2x1x128xf32>
    %6 = vector.shape_cast %5 : vector<1x2x1x128xf32> to vector<2x128xf32>
    %7 = vector.shape_cast %6 : vector<2x128xf32> to vector<2x1x128xf32>
    %c0_8 = arith.constant 0 : index
    %c0_9 = arith.constant 0 : index
    %c0_10 = arith.constant 0 : index
    %c0_11 = arith.constant 0 : index
    %8 = vector.load %arg5[%c0_8, %c0_9, %c0_10, %c0_11] : memref<1x8x8x128xf32, #tpu.memory_space<vmem>>, vector<1x1x8x128xf32>
    %9 = vector.shape_cast %8 : vector<1x1x8x128xf32> to vector<8x128xf32>
    %10 = vector.shape_cast %9 : vector<8x128xf32> to vector<1x8x128xf32>
    %c0_12 = arith.constant 0 : index
    %c0_13 = arith.constant 0 : index
    %c0_14 = arith.constant 0 : index
    %c0_15 = arith.constant 0 : index
    %11 = vector.load %arg6[%c0_12, %c0_13, %c0_14, %c0_15] : memref<1x8x8x128xf32, #tpu.memory_space<vmem>>, vector<1x1x8x128xf32>
    %12 = vector.shape_cast %11 : vector<1x1x8x128xf32> to vector<8x128xf32>
    %13 = vector.shape_cast %12 : vector<8x128xf32> to vector<1x8x128xf32>
    %14 = vector.broadcast %4 : vector<2x1x128xf32> to vector<2x8x128xf32>
    %15 = vector.broadcast %10 : vector<1x8x128xf32> to vector<2x8x128xf32>
    %16 = arith.mulf %14, %15 : vector<2x8x128xf32>
    %17 = vector.broadcast %7 : vector<2x1x128xf32> to vector<2x8x128xf32>
    %18 = vector.broadcast %13 : vector<1x8x128xf32> to vector<2x8x128xf32>
    %19 = arith.mulf %17, %18 : vector<2x8x128xf32>
    %20 = arith.subf %16, %19 : vector<2x8x128xf32>
    %21 = arith.addf %0, %20 : vector<2x8x128xf32>
    %22 = vector.broadcast %4 : vector<2x1x128xf32> to vector<2x8x128xf32>
    %23 = vector.broadcast %13 : vector<1x8x128xf32> to vector<2x8x128xf32>
    %24 = arith.mulf %22, %23 : vector<2x8x128xf32>
    %25 = vector.broadcast %7 : vector<2x1x128xf32> to vector<2x8x128xf32>
    %26 = vector.broadcast %10 : vector<1x8x128xf32> to vector<2x8x128xf32>
    %27 = arith.mulf %25, %26 : vector<2x8x128xf32>
    %28 = arith.addf %24, %27 : vector<2x8x128xf32>
    %29 = arith.addf %1, %28 : vector<2x8x128xf32>
    %c0_16 = arith.constant 0 : index
    %c0_17 = arith.constant 0 : index
    %c1 = arith.constant 1 : index
    %c0_18 = arith.constant 0 : index
    %30 = vector.load %arg3[%c0_16, %c0_17, %c1, %c0_18] : memref<1x2x8x128xf32, #tpu.memory_space<vmem>>, vector<1x2x1x128xf32>
    %31 = vector.shape_cast %30 : vector<1x2x1x128xf32> to vector<2x128xf32>
    %32 = vector.shape_cast %31 : vector<2x128xf32> to vector<2x1x128xf32>
    %c0_19 = arith.constant 0 : index
    %c0_20 = arith.constant 0 : index
    %c1_21 = arith.constant 1 : index
    %c0_22 = arith.constant 0 : index
    %33 = vector.load %arg4[%c0_19, %c0_20, %c1_21, %c0_22] : memref<1x2x8x128xf32, #tpu.memory_space<vmem>>, vector<1x2x1x128xf32>
    %34 = vector.shape_cast %33 : vector<1x2x1x128xf32> to vector<2x128xf32>
    %35 = vector.shape_cast %34 : vector<2x128xf32> to vector<2x1x128xf32>
    %c0_23 = arith.constant 0 : index
    %c1_24 = arith.constant 1 : index
    %c0_25 = arith.constant 0 : index
    %c0_26 = arith.constant 0 : index
    %36 = vector.load %arg5[%c0_23, %c1_24, %c0_25, %c0_26] : memref<1x8x8x128xf32, #tpu.memory_space<vmem>>, vector<1x1x8x128xf32>
    %37 = vector.shape_cast %36 : vector<1x1x8x128xf32> to vector<8x128xf32>
    %38 = vector.shape_cast %37 : vector<8x128xf32> to vector<1x8x128xf32>
    %c0_27 = arith.constant 0 : index
    %c1_28 = arith.constant 1 : index
    %c0_29 = arith.constant 0 : index
    %c0_30 = arith.constant 0 : index
    %39 = vector.load %arg6[%c0_27, %c1_28, %c0_29, %c0_30] : memref<1x8x8x128xf32, #tpu.memory_space<vmem>>, vector<1x1x8x128xf32>
    %40 = vector.shape_cast %39 : vector<1x1x8x128xf32> to vector<8x128xf32>
    %41 = vector.shape_cast %40 : vector<8x128xf32> to vector<1x8x128xf32>
    %42 = vector.broadcast %32 : vector<2x1x128xf32> to vector<2x8x128xf32>
    %43 = vector.broadcast %38 : vector<1x8x128xf32> to vector<2x8x128xf32>
    %44 = arith.mulf %42, %43 : vector<2x8x128xf32>
    %45 = vector.broadcast %35 : vector<2x1x128xf32> to vector<2x8x128xf32>
    %46 = vector.broadcast %41 : vector<1x8x128xf32> to vector<2x8x128xf32>
    %47 = arith.mulf %45, %46 : vector<2x8x128xf32>
    %48 = arith.subf %44, %47 : vector<2x8x128xf32>
    %49 = arith.addf %21, %48 : vector<2x8x128xf32>
    %50 = vector.broadcast %32 : vector<2x1x128xf32> to vector<2x8x128xf32>
    %51 = vector.broadcast %41 : vector<1x8x128xf32> to vector<2x8x128xf32>
    %52 = arith.mulf %50, %51 : vector<2x8x128xf32>
    %53 = vector.broadcast %35 : vector<2x1x128xf32> to vector<2x8x128xf32>
    %54 = vector.broadcast %38 : vector<1x8x128xf32> to vector<2x8x128xf32>
    %55 = arith.mulf %53, %54 : vector<2x8x128xf32>
    %56 = arith.addf %52, %55 : vector<2x8x128xf32>
    %57 = arith.addf %29, %56 : vector<2x8x128xf32>
    %c0_31 = arith.constant 0 : index
    %c0_32 = arith.constant 0 : index
    %c2 = arith.constant 2 : index
    %c0_33 = arith.constant 0 : index
    %58 = vector.load %arg3[%c0_31, %c0_32, %c2, %c0_33] : memref<1x2x8x128xf32, #tpu.memory_space<vmem>>, vector<1x2x1x128xf32>
    %59 = vector.shape_cast %58 : vector<1x2x1x128xf32> to vector<2x128xf32>
    %60 = vector.shape_cast %59 : vector<2x128xf32> to vector<2x1x128xf32>
    %c0_34 = arith.constant 0 : index
    %c0_35 = arith.constant 0 : index
    %c2_36 = arith.constant 2 : index
    %c0_37 = arith.constant 0 : index
    %61 = vector.load %arg4[%c0_34, %c0_35, %c2_36, %c0_37] : memref<1x2x8x128xf32, #tpu.memory_space<vmem>>, vector<1x2x1x128xf32>
    %62 = vector.shape_cast %61 : vector<1x2x1x128xf32> to vector<2x128xf32>
    %63 = vector.shape_cast %62 : vector<2x128xf32> to vector<2x1x128xf32>
    %c0_38 = arith.constant 0 : index
    %c2_39 = arith.constant 2 : index
    %c0_40 = arith.constant 0 : index
    %c0_41 = arith.constant 0 : index
    %64 = vector.load %arg5[%c0_38, %c2_39, %c0_40, %c0_41] : memref<1x8x8x128xf32, #tpu.memory_space<vmem>>, vector<1x1x8x128xf32>
    %65 = vector.shape_cast %64 : vector<1x1x8x128xf32> to vector<8x128xf32>
    %66 = vector.shape_cast %65 : vector<8x128xf32> to vector<1x8x128xf32>
    %c0_42 = arith.constant 0 : index
    %c2_43 = arith.constant 2 : index
    %c0_44 = arith.constant 0 : index
    %c0_45 = arith.constant 0 : index
    %67 = vector.load %arg6[%c0_42, %c2_43, %c0_44, %c0_45] : memref<1x8x8x128xf32, #tpu.memory_space<vmem>>, vector<1x1x8x128xf32>
    %68 = vector.shape_cast %67 : vector<1x1x8x128xf32> to vector<8x128xf32>
    %69 = vector.shape_cast %68 : vector<8x128xf32> to vector<1x8x128xf32>
    %70 = vector.broadcast %60 : vector<2x1x128xf32> to vector<2x8x128xf32>
    %71 = vector.broadcast %66 : vector<1x8x128xf32> to vector<2x8x128xf32>
    %72 = arith.mulf %70, %71 : vector<2x8x128xf32>
    %73 = vector.broadcast %63 : vector<2x1x128xf32> to vector<2x8x128xf32>
    %74 = vector.broadcast %69 : vector<1x8x128xf32> to vector<2x8x128xf32>
    %75 = arith.mulf %73, %74 : vector<2x8x128xf32>
    %76 = arith.subf %72, %75 : vector<2x8x128xf32>
    %77 = arith.addf %49, %76 : vector<2x8x128xf32>
    %78 = vector.broadcast %60 : vector<2x1x128xf32> to vector<2x8x128xf32>
    %79 = vector.broadcast %69 : vector<1x8x128xf32> to vector<2x8x128xf32>
    %80 = arith.mulf %78, %79 : vector<2x8x128xf32>
    %81 = vector.broadcast %63 : vector<2x1x128xf32> to vector<2x8x128xf32>
    %82 = vector.broadcast %66 : vector<1x8x128xf32> to vector<2x8x128xf32>
    %83 = arith.mulf %81, %82 : vector<2x8x128xf32>
    %84 = arith.addf %80, %83 : vector<2x8x128xf32>
    %85 = arith.addf %57, %84 : vector<2x8x128xf32>
    %c0_46 = arith.constant 0 : index
    %c0_47 = arith.constant 0 : index
    %c3 = arith.constant 3 : index
    %c0_48 = arith.constant 0 : index
    %86 = vector.load %arg3[%c0_46, %c0_47, %c3, %c0_48] : memref<1x2x8x128xf32, #tpu.memory_space<vmem>>, vector<1x2x1x128xf32>
    %87 = vector.shape_cast %86 : vector<1x2x1x128xf32> to vector<2x128xf32>
    %88 = vector.shape_cast %87 : vector<2x128xf32> to vector<2x1x128xf32>
    %c0_49 = arith.constant 0 : index
    %c0_50 = arith.constant 0 : index
    %c3_51 = arith.constant 3 : index
    %c0_52 = arith.constant 0 : index
    %89 = vector.load %arg4[%c0_49, %c0_50, %c3_51, %c0_52] : memref<1x2x8x128xf32, #tpu.memory_space<vmem>>, vector<1x2x1x128xf32>
    %90 = vector.shape_cast %89 : vector<1x2x1x128xf32> to vector<2x128xf32>
    %91 = vector.shape_cast %90 : vector<2x128xf32> to vector<2x1x128xf32>
    %c0_53 = arith.constant 0 : index
    %c3_54 = arith.constant 3 : index
    %c0_55 = arith.constant 0 : index
    %c0_56 = arith.constant 0 : index
    %92 = vector.load %arg5[%c0_53, %c3_54, %c0_55, %c0_56] : memref<1x8x8x128xf32, #tpu.memory_space<vmem>>, vector<1x1x8x128xf32>
    %93 = vector.shape_cast %92 : vector<1x1x8x128xf32> to vector<8x128xf32>
    %94 = vector.shape_cast %93 : vector<8x128xf32> to vector<1x8x128xf32>
    %c0_57 = arith.constant 0 : index
    %c3_58 = arith.constant 3 : index
    %c0_59 = arith.constant 0 : index
    %c0_60 = arith.constant 0 : index
    %95 = vector.load %arg6[%c0_57, %c3_58, %c0_59, %c0_60] : memref<1x8x8x128xf32, #tpu.memory_space<vmem>>, vector<1x1x8x128xf32>
    %96 = vector.shape_cast %95 : vector<1x1x8x128xf32> to vector<8x128xf32>
    %97 = vector.shape_cast %96 : vector<8x128xf32> to vector<1x8x128xf32>
    %98 = vector.broadcast %88 : vector<2x1x128xf32> to vector<2x8x128xf32>
    %99 = vector.broadcast %94 : vector<1x8x128xf32> to vector<2x8x128xf32>
    %100 = arith.mulf %98, %99 : vector<2x8x128xf32>
    %101 = vector.broadcast %91 : vector<2x1x128xf32> to vector<2x8x128xf32>
    %102 = vector.broadcast %97 : vector<1x8x128xf32> to vector<2x8x128xf32>
    %103 = arith.mulf %101, %102 : vector<2x8x128xf32>
    %104 = arith.subf %100, %103 : vector<2x8x128xf32>
    %105 = arith.addf %77, %104 : vector<2x8x128xf32>
    %106 = vector.broadcast %88 : vector<2x1x128xf32> to vector<2x8x128xf32>
    %107 = vector.broadcast %97 : vector<1x8x128xf32> to vector<2x8x128xf32>
    %108 = arith.mulf %106, %107 : vector<2x8x128xf32>
    %109 = vector.broadcast %91 : vector<2x1x128xf32> to vector<2x8x128xf32>
    %110 = vector.broadcast %94 : vector<1x8x128xf32> to vector<2x8x128xf32>
    %111 = arith.mulf %109, %110 : vector<2x8x128xf32>
    %112 = arith.addf %108, %111 : vector<2x8x128xf32>
    %113 = arith.addf %85, %112 : vector<2x8x128xf32>
    %c0_61 = arith.constant 0 : index
    %c0_62 = arith.constant 0 : index
    %c4 = arith.constant 4 : index
    %c0_63 = arith.constant 0 : index
    %114 = vector.load %arg3[%c0_61, %c0_62, %c4, %c0_63] : memref<1x2x8x128xf32, #tpu.memory_space<vmem>>, vector<1x2x1x128xf32>
    %115 = vector.shape_cast %114 : vector<1x2x1x128xf32> to vector<2x128xf32>
    %116 = vector.shape_cast %115 : vector<2x128xf32> to vector<2x1x128xf32>
    %c0_64 = arith.constant 0 : index
    %c0_65 = arith.constant 0 : index
    %c4_66 = arith.constant 4 : index
    %c0_67 = arith.constant 0 : index
    %117 = vector.load %arg4[%c0_64, %c0_65, %c4_66, %c0_67] : memref<1x2x8x128xf32, #tpu.memory_space<vmem>>, vector<1x2x1x128xf32>
    %118 = vector.shape_cast %117 : vector<1x2x1x128xf32> to vector<2x128xf32>
    %119 = vector.shape_cast %118 : vector<2x128xf32> to vector<2x1x128xf32>
    %c0_68 = arith.constant 0 : index
    %c4_69 = arith.constant 4 : index
    %c0_70 = arith.constant 0 : index
    %c0_71 = arith.constant 0 : index
    %120 = vector.load %arg5[%c0_68, %c4_69, %c0_70, %c0_71] : memref<1x8x8x128xf32, #tpu.memory_space<vmem>>, vector<1x1x8x128xf32>
    %121 = vector.shape_cast %120 : vector<1x1x8x128xf32> to vector<8x128xf32>
    %122 = vector.shape_cast %121 : vector<8x128xf32> to vector<1x8x128xf32>
    %c0_72 = arith.constant 0 : index
    %c4_73 = arith.constant 4 : index
    %c0_74 = arith.constant 0 : index
    %c0_75 = arith.constant 0 : index
    %123 = vector.load %arg6[%c0_72, %c4_73, %c0_74, %c0_75] : memref<1x8x8x128xf32, #tpu.memory_space<vmem>>, vector<1x1x8x128xf32>
    %124 = vector.shape_cast %123 : vector<1x1x8x128xf32> to vector<8x128xf32>
    %125 = vector.shape_cast %124 : vector<8x128xf32> to vector<1x8x128xf32>
    %126 = vector.broadcast %116 : vector<2x1x128xf32> to vector<2x8x128xf32>
    %127 = vector.broadcast %122 : vector<1x8x128xf32> to vector<2x8x128xf32>
    %128 = arith.mulf %126, %127 : vector<2x8x128xf32>
    %129 = vector.broadcast %119 : vector<2x1x128xf32> to vector<2x8x128xf32>
    %130 = vector.broadcast %125 : vector<1x8x128xf32> to vector<2x8x128xf32>
    %131 = arith.mulf %129, %130 : vector<2x8x128xf32>
    %132 = arith.subf %128, %131 : vector<2x8x128xf32>
    %133 = arith.addf %105, %132 : vector<2x8x128xf32>
    %134 = vector.broadcast %116 : vector<2x1x128xf32> to vector<2x8x128xf32>
    %135 = vector.broadcast %125 : vector<1x8x128xf32> to vector<2x8x128xf32>
    %136 = arith.mulf %134, %135 : vector<2x8x128xf32>
    %137 = vector.broadcast %119 : vector<2x1x128xf32> to vector<2x8x128xf32>
    %138 = vector.broadcast %122 : vector<1x8x128xf32> to vector<2x8x128xf32>
    %139 = arith.mulf %137, %138 : vector<2x8x128xf32>
    %140 = arith.addf %136, %139 : vector<2x8x128xf32>
    %141 = arith.addf %113, %140 : vector<2x8x128xf32>
    %c0_76 = arith.constant 0 : index
    %c0_77 = arith.constant 0 : index
    %c5 = arith.constant 5 : index
    %c0_78 = arith.constant 0 : index
    %142 = vector.load %arg3[%c0_76, %c0_77, %c5, %c0_78] : memref<1x2x8x128xf32, #tpu.memory_space<vmem>>, vector<1x2x1x128xf32>
    %143 = vector.shape_cast %142 : vector<1x2x1x128xf32> to vector<2x128xf32>
    %144 = vector.shape_cast %143 : vector<2x128xf32> to vector<2x1x128xf32>
    %c0_79 = arith.constant 0 : index
    %c0_80 = arith.constant 0 : index
    %c5_81 = arith.constant 5 : index
    %c0_82 = arith.constant 0 : index
    %145 = vector.load %arg4[%c0_79, %c0_80, %c5_81, %c0_82] : memref<1x2x8x128xf32, #tpu.memory_space<vmem>>, vector<1x2x1x128xf32>
    %146 = vector.shape_cast %145 : vector<1x2x1x128xf32> to vector<2x128xf32>
    %147 = vector.shape_cast %146 : vector<2x128xf32> to vector<2x1x128xf32>
    %c0_83 = arith.constant 0 : index
    %c5_84 = arith.constant 5 : index
    %c0_85 = arith.constant 0 : index
    %c0_86 = arith.constant 0 : index
    %148 = vector.load %arg5[%c0_83, %c5_84, %c0_85, %c0_86] : memref<1x8x8x128xf32, #tpu.memory_space<vmem>>, vector<1x1x8x128xf32>
    %149 = vector.shape_cast %148 : vector<1x1x8x128xf32> to vector<8x128xf32>
    %150 = vector.shape_cast %149 : vector<8x128xf32> to vector<1x8x128xf32>
    %c0_87 = arith.constant 0 : index
    %c5_88 = arith.constant 5 : index
    %c0_89 = arith.constant 0 : index
    %c0_90 = arith.constant 0 : index
    %151 = vector.load %arg6[%c0_87, %c5_88, %c0_89, %c0_90] : memref<1x8x8x128xf32, #tpu.memory_space<vmem>>, vector<1x1x8x128xf32>
    %152 = vector.shape_cast %151 : vector<1x1x8x128xf32> to vector<8x128xf32>
    %153 = vector.shape_cast %152 : vector<8x128xf32> to vector<1x8x128xf32>
    %154 = vector.broadcast %144 : vector<2x1x128xf32> to vector<2x8x128xf32>
    %155 = vector.broadcast %150 : vector<1x8x128xf32> to vector<2x8x128xf32>
    %156 = arith.mulf %154, %155 : vector<2x8x128xf32>
    %157 = vector.broadcast %147 : vector<2x1x128xf32> to vector<2x8x128xf32>
    %158 = vector.broadcast %153 : vector<1x8x128xf32> to vector<2x8x128xf32>
    %159 = arith.mulf %157, %158 : vector<2x8x128xf32>
    %160 = arith.subf %156, %159 : vector<2x8x128xf32>
    %161 = arith.addf %133, %160 : vector<2x8x128xf32>
    %162 = vector.broadcast %144 : vector<2x1x128xf32> to vector<2x8x128xf32>
    %163 = vector.broadcast %153 : vector<1x8x128xf32> to vector<2x8x128xf32>
    %164 = arith.mulf %162, %163 : vector<2x8x128xf32>
    %165 = vector.broadcast %147 : vector<2x1x128xf32> to vector<2x8x128xf32>
    %166 = vector.broadcast %150 : vector<1x8x128xf32> to vector<2x8x128xf32>
    %167 = arith.mulf %165, %166 : vector<2x8x128xf32>
    %168 = arith.addf %164, %167 : vector<2x8x128xf32>
    %169 = arith.addf %141, %168 : vector<2x8x128xf32>
    %c0_91 = arith.constant 0 : index
    %c0_92 = arith.constant 0 : index
    %c6 = arith.constant 6 : index
    %c0_93 = arith.constant 0 : index
    %170 = vector.load %arg3[%c0_91, %c0_92, %c6, %c0_93] : memref<1x2x8x128xf32, #tpu.memory_space<vmem>>, vector<1x2x1x128xf32>
    %171 = vector.shape_cast %170 : vector<1x2x1x128xf32> to vector<2x128xf32>
    %172 = vector.shape_cast %171 : vector<2x128xf32> to vector<2x1x128xf32>
    %c0_94 = arith.constant 0 : index
    %c0_95 = arith.constant 0 : index
    %c6_96 = arith.constant 6 : index
    %c0_97 = arith.constant 0 : index
    %173 = vector.load %arg4[%c0_94, %c0_95, %c6_96, %c0_97] : memref<1x2x8x128xf32, #tpu.memory_space<vmem>>, vector<1x2x1x128xf32>
    %174 = vector.shape_cast %173 : vector<1x2x1x128xf32> to vector<2x128xf32>
    %175 = vector.shape_cast %174 : vector<2x128xf32> to vector<2x1x128xf32>
    %c0_98 = arith.constant 0 : index
    %c6_99 = arith.constant 6 : index
    %c0_100 = arith.constant 0 : index
    %c0_101 = arith.constant 0 : index
    %176 = vector.load %arg5[%c0_98, %c6_99, %c0_100, %c0_101] : memref<1x8x8x128xf32, #tpu.memory_space<vmem>>, vector<1x1x8x128xf32>
    %177 = vector.shape_cast %176 : vector<1x1x8x128xf32> to vector<8x128xf32>
    %178 = vector.shape_cast %177 : vector<8x128xf32> to vector<1x8x128xf32>
    %c0_102 = arith.constant 0 : index
    %c6_103 = arith.constant 6 : index
    %c0_104 = arith.constant 0 : index
    %c0_105 = arith.constant 0 : index
    %179 = vector.load %arg6[%c0_102, %c6_103, %c0_104, %c0_105] : memref<1x8x8x128xf32, #tpu.memory_space<vmem>>, vector<1x1x8x128xf32>
    %180 = vector.shape_cast %179 : vector<1x1x8x128xf32> to vector<8x128xf32>
    %181 = vector.shape_cast %180 : vector<8x128xf32> to vector<1x8x128xf32>
    %182 = vector.broadcast %172 : vector<2x1x128xf32> to vector<2x8x128xf32>
    %183 = vector.broadcast %178 : vector<1x8x128xf32> to vector<2x8x128xf32>
    %184 = arith.mulf %182, %183 : vector<2x8x128xf32>
    %185 = vector.broadcast %175 : vector<2x1x128xf32> to vector<2x8x128xf32>
    %186 = vector.broadcast %181 : vector<1x8x128xf32> to vector<2x8x128xf32>
    %187 = arith.mulf %185, %186 : vector<2x8x128xf32>
    %188 = arith.subf %184, %187 : vector<2x8x128xf32>
    %189 = arith.addf %161, %188 : vector<2x8x128xf32>
    %190 = vector.broadcast %172 : vector<2x1x128xf32> to vector<2x8x128xf32>
    %191 = vector.broadcast %181 : vector<1x8x128xf32> to vector<2x8x128xf32>
    %192 = arith.mulf %190, %191 : vector<2x8x128xf32>
    %193 = vector.broadcast %175 : vector<2x1x128xf32> to vector<2x8x128xf32>
    %194 = vector.broadcast %178 : vector<1x8x128xf32> to vector<2x8x128xf32>
    %195 = arith.mulf %193, %194 : vector<2x8x128xf32>
    %196 = arith.addf %192, %195 : vector<2x8x128xf32>
    %197 = arith.addf %169, %196 : vector<2x8x128xf32>
    %c0_106 = arith.constant 0 : index
    %c0_107 = arith.constant 0 : index
    %c7 = arith.constant 7 : index
    %c0_108 = arith.constant 0 : index
    %198 = vector.load %arg3[%c0_106, %c0_107, %c7, %c0_108] : memref<1x2x8x128xf32, #tpu.memory_space<vmem>>, vector<1x2x1x128xf32>
    %199 = vector.shape_cast %198 : vector<1x2x1x128xf32> to vector<2x128xf32>
    %200 = vector.shape_cast %199 : vector<2x128xf32> to vector<2x1x128xf32>
    %c0_109 = arith.constant 0 : index
    %c0_110 = arith.constant 0 : index
    %c7_111 = arith.constant 7 : index
    %c0_112 = arith.constant 0 : index
    %201 = vector.load %arg4[%c0_109, %c0_110, %c7_111, %c0_112] : memref<1x2x8x128xf32, #tpu.memory_space<vmem>>, vector<1x2x1x128xf32>
    %202 = vector.shape_cast %201 : vector<1x2x1x128xf32> to vector<2x128xf32>
    %203 = vector.shape_cast %202 : vector<2x128xf32> to vector<2x1x128xf32>
    %c0_113 = arith.constant 0 : index
    %c7_114 = arith.constant 7 : index
    %c0_115 = arith.constant 0 : index
    %c0_116 = arith.constant 0 : index
    %204 = vector.load %arg5[%c0_113, %c7_114, %c0_115, %c0_116] : memref<1x8x8x128xf32, #tpu.memory_space<vmem>>, vector<1x1x8x128xf32>
    %205 = vector.shape_cast %204 : vector<1x1x8x128xf32> to vector<8x128xf32>
    %206 = vector.shape_cast %205 : vector<8x128xf32> to vector<1x8x128xf32>
    %c0_117 = arith.constant 0 : index
    %c7_118 = arith.constant 7 : index
    %c0_119 = arith.constant 0 : index
    %c0_120 = arith.constant 0 : index
    %207 = vector.load %arg6[%c0_117, %c7_118, %c0_119, %c0_120] : memref<1x8x8x128xf32, #tpu.memory_space<vmem>>, vector<1x1x8x128xf32>
    %208 = vector.shape_cast %207 : vector<1x1x8x128xf32> to vector<8x128xf32>
    %209 = vector.shape_cast %208 : vector<8x128xf32> to vector<1x8x128xf32>
    %210 = vector.broadcast %200 : vector<2x1x128xf32> to vector<2x8x128xf32>
    %211 = vector.broadcast %206 : vector<1x8x128xf32> to vector<2x8x128xf32>
    %212 = arith.mulf %210, %211 : vector<2x8x128xf32>
    %213 = vector.broadcast %203 : vector<2x1x128xf32> to vector<2x8x128xf32>
    %214 = vector.broadcast %209 : vector<1x8x128xf32> to vector<2x8x128xf32>
    %215 = arith.mulf %213, %214 : vector<2x8x128xf32>
    %216 = arith.subf %212, %215 : vector<2x8x128xf32>
    %217 = arith.addf %189, %216 : vector<2x8x128xf32>
    %218 = vector.broadcast %200 : vector<2x1x128xf32> to vector<2x8x128xf32>
    %219 = vector.broadcast %209 : vector<1x8x128xf32> to vector<2x8x128xf32>
    %220 = arith.mulf %218, %219 : vector<2x8x128xf32>
    %221 = vector.broadcast %203 : vector<2x1x128xf32> to vector<2x8x128xf32>
    %222 = vector.broadcast %206 : vector<1x8x128xf32> to vector<2x8x128xf32>
    %223 = arith.mulf %221, %222 : vector<2x8x128xf32>
    %224 = arith.addf %220, %223 : vector<2x8x128xf32>
    %225 = arith.addf %197, %224 : vector<2x8x128xf32>
    %c0_121 = arith.constant 0 : index
    %c0_122 = arith.constant 0 : index
    %c0_123 = arith.constant 0 : index
    %c0_124 = arith.constant 0 : index
    %226 = vector.load %arg7[%c0_121, %c0_122, %c0_123, %c0_124] : memref<1x2x8x128xf32, #tpu.memory_space<vmem>>, vector<1x2x8x128xf32>
    %227 = vector.shape_cast %226 : vector<1x2x8x128xf32> to vector<2x8x128xf32>
    %228 = vector.shape_cast %217 : vector<2x8x128xf32> to vector<1x2x8x128xf32>
    tpu.vector_store %arg7[%c0_121, %c0_122, %c0_123, %c0_124], %228 {strides = array<i32>} : memref<1x2x8x128xf32, #tpu.memory_space<vmem>>, vector<1x2x8x128xf32>,
    %c0_125 = arith.constant 0 : index
    %c0_126 = arith.constant 0 : index
    %c0_127 = arith.constant 0 : index
    %c0_128 = arith.constant 0 : index
    %229 = vector.load %arg8[%c0_125, %c0_126, %c0_127, %c0_128] : memref<1x2x8x128xf32, #tpu.memory_space<vmem>>, vector<1x2x8x128xf32>
    %230 = vector.shape_cast %229 : vector<1x2x8x128xf32> to vector<2x8x128xf32>
    %231 = vector.shape_cast %225 : vector<2x8x128xf32> to vector<1x2x8x128xf32>
    tpu.vector_store %arg8[%c0_125, %c0_126, %c0_127, %c0_128], %231 {strides = array<i32>} : memref<1x2x8x128xf32, #tpu.memory_space<vmem>>, vector<1x2x8x128xf32>,
    return
  }
  func.func @transform_0(%arg0: i32, %arg1: i32, %arg2: i32) -> (i32, i32, i32, i32) {
    %c0_i32 = arith.constant 0 : i32
    %c0_i32_0 = arith.constant 0 : i32
    return %arg0, %arg2, %c0_i32, %arg1 : i32, i32, i32, i32
  }
  func.func @transform_1(%arg0: i32, %arg1: i32, %arg2: i32) -> (i32, i32, i32, i32) {
    %c0_i32 = arith.constant 0 : i32
    %c0_i32_0 = arith.constant 0 : i32
    return %arg0, %arg2, %c0_i32, %arg1 : i32, i32, i32, i32
  }
  func.func @transform_2(%arg0: i32, %arg1: i32, %arg2: i32) -> (i32, i32, i32, i32) {
    %c0_i32 = arith.constant 0 : i32
    %c0_i32_0 = arith.constant 0 : i32
    %c0_i32_1 = arith.constant 0 : i32
    return %arg0, %c0_i32, %c0_i32_0, %arg1 : i32, i32, i32, i32
  }
  func.func @transform_3(%arg0: i32, %arg1: i32, %arg2: i32) -> (i32, i32, i32, i32) {
    %c0_i32 = arith.constant 0 : i32
    %c0_i32_0 = arith.constant 0 : i32
    %c0_i32_1 = arith.constant 0 : i32
    return %arg0, %c0_i32, %c0_i32_0, %arg1 : i32, i32, i32, i32
  }
  func.func @transform_4(%arg0: i32, %arg1: i32, %arg2: i32) -> (i32, i32, i32, i32) {
    %c0_i32 = arith.constant 0 : i32
    %c0_i32_0 = arith.constant 0 : i32
    return %arg0, %arg2, %c0_i32, %arg1 : i32, i32, i32, i32
  }
  func.func @transform_5(%arg0: i32, %arg1: i32, %arg2: i32) -> (i32, i32, i32, i32) {
    %c0_i32 = arith.constant 0 : i32
    %c0_i32_0 = arith.constant 0 : i32
    return %arg0, %arg2, %c0_i32, %arg1 : i32, i32, i32, i32
  }
}

</mosaic_0001>

<bundles_post_ra>
// kernel: tpu_custom_call.1
= control target key start
LH: loop header
LB: loop body
LE: loop exit
PB: predicated region body
PF: predicated region fallthrough
CT: control target
= control target key end

     0   :  { %s1906_s0 = inlined_call_operand.hbm [shape: f32[2,2,8,128], index: 0, kind: input, shape index: {}]   ;;  %s1907_s1 = inlined_call_operand.hbm [shape: f32[2,2,8,128], index: 1, kind: input, shape index: {}]   ;;  %s1908_s2 = inlined_call_operand.hbm [shape: f32[2,8,8,128], index: 2, kind: input, shape index: {}]   ;;  %s1909_s3 = inlined_call_operand.hbm [shape: f32[2,8,8,128], index: 3, kind: input, shape index: {}]   ;;  %s1910_s4 = inlined_call_operand.hbm [shape: f32[2,2,8,128], index: 4, kind: output, shape index: {0}]   ;;  %s1911_s5 = inlined_call_operand.hbm [shape: f32[2,2,8,128], index: 5, kind: output, shape index: {1}]  }
   0x1   :  { %1919 = sst [smem:[#allocation19_spill]] %s1906_s0 }
   0x2   :  { %1920 = sst [smem:[#allocation20_spill]] %s1907_s1 }
   0x3   :  { %1921 = sst [smem:[#allocation21_spill]] %s1908_s2 }
   0x4   :  { %1922 = sst [smem:[#allocation22_spill]] %s1909_s3 }
   0x5   :  { %11 = vsyncpa [#allocation3], 0 }
   0x6   :  { %13 = vsyncpa [#allocation3 + $0x1], 0 }
   0x7   :  { %14 = vsyncpa [#allocation6], 0 }
   0x8   :  { %16 = vsyncpa [#allocation6 + $0x1], 0 }
   0x9   :  { %17 = vsyncpa [#allocation9], 0 }
   0xa   :  { %18 = vsyncpa [#allocation4], 0 }
   0xb   :  { %20 = vsyncpa [#allocation4 + $0x1], 0 }
   0xc   :  { %21 = vsyncpa [#allocation12], 0 }
   0xd   :  { %23 = vsyncpa [#allocation12 + $0x1], 0  ;;  %s1365_s18 = smov 0   ;;  %s1367_s19 = smov 0  }
   0xe   :  { %s1369_s20 = smov 0   ;;  %s1371_s21 = smov 0  }
   0xf   :  { %s1373_s22 = smov 0   ;;  %s1375_s23 = smov 0  }
  0x10 LB: > { %s1396_s24 = sadd.s32 4294967295, %s1323_s23   ;;  %s936_s25 = sadd.s32 4294967294, %s1323_s23   ;;  %s1323_s23 = sphi %s1375_s23, %s29_s23   ;;  %s1319_s22 = sphi %s1373_s22, %s1944_s22   ;;  %s1315_s21 = sphi %s1371_s21, %s1943_s21   ;;  %s1311_s20 = sphi %s1369_s20, %s1942_s20   ;;  %s1307_s19 = sphi %s1367_s19, %s1941_s19   ;;  %s1303_s18 = sphi %s1365_s18, %s1940_s18  }
  0x11   : > { %p72_p0 = scmp.ne.s32.totalorder %s1307_s19, %s1303_s18  ;;  %p73_p1 = scmp.eq.s32.totalorder %s1396_s24, 0 }
  0x12   : > { %p192_p3 = scmp.eq.s32.totalorder %s936_s25, 1  ;;  %p937_p5 = scmp.ge.s32.totalorder %s1323_s23, 1 }
  0x13   : > { %p1403_p4 = por %p73_p1, %p72_p0  ;;  %p229_p7 = scmp.lt.s32.totalorder %s1323_s23, 3 }
  0x14   : > { %p1408_p6 = por %p192_p3, %p72_p0  ;;  %s994_s28 = sshll.u32 %s1315_s21, 10 }
  0x15   : > { %s1923_s26 = scalar_select %p1403_p4, 1, 0 }
  0x16   : > { %s1924_s27 = scalar_select %p1408_p6, 1, 0 }
  0x17   : > { %p1414_p8 = pnand %p937_p5, %p229_p7  ;;  %s1926_s2 = sld [smem:[#allocation21_spill]] }
  0x18   : > { %s1325_s8 = smov [#allocation7]   ;;  %s1928_s3 = sld [smem:[#allocation22_spill]] }
  0x19   : > { %s1925_s29 = scalar_select %p1414_p8, 1, 0 }
  0x1a   : > { %s245_s9 = sshll.u32 %s1325_s8, 4  ;;  %p1012_p9 = pneg %p1414_p8  ;;  %s1425_s9 = int_to_ptr.vmem [resolvable:$true] %s245_s9 }
  0x1b   : > { %s1326_s14 = smov [#allocation8]  }
  0x1c   : > { %p1430_p11 = pnand %p1012_p9, %p1403_p4  ;;  %s262_s15 = sshll.u32 %s1326_s14, 4  ;;  %s263_s15 = int_to_ptr.vmem [resolvable:$true] %s262_s15 }
  0x1d   : > { %s1421_s7 = scalar_lea.hbm %s1926_s2, %s994_s28  ;;  %s1094_s30 = scalar_lea.hbm %s1926_s2, 2048 }
  0x1e   : > { %s1437_s13 = scalar_lea.hbm %s1928_s3, %s994_s28  ;;  %s1089_s16 = scalar_lea.hbm %s1421_s7, 1024 }
  0x1f   : > { %p1090_p12 = scmp.ne.s32.totalorder %s1421_s7, %s1089_s16  ;;  %p1091_p13 = pneg %p1430_p11 }
  0x20   : > { %p1095_p3 = scmp.lt.s32.totalorder %s1421_s7, %s1926_s2  ;;  %p1096_p5 = scmp.lt.s32.totalorder %s1094_s30, %s1089_s16 }
  0x21   : > { %p1092_p0 = pnand %p1091_p13, %p1090_p12 }
  0x22   : > { %p1097_p7 = por %p1096_p5, %p1095_p3 }
  0x23   : > { %p1093_p1 = pneg %p1092_p0 }
  0x25   : > { %p1098_p9 = pnand %p1097_p7, %p1093_p1 }
  0x27   : > { %1101 = shalt.err (!%p1098_p9)
}
  0x28   : > { %s1102_s28 = scalar_lea.vmem %s1425_s9, 1024  ;;  %p1110_p2 = scmp.lt.s32.totalorder %s1425_s9, %s1425_s9 }
  0x29   : > { %p1103_p10 = scmp.ne.s32.totalorder %s1425_s9, %s1102_s28  ;;  %p1111_p6 = scmp.lt.s32.totalorder %s1102_s28, %s1102_s28 }
  0x2b   : > { %p1105_p12 = pnand %p1103_p10, %p1091_p13  ;;  %p1112_p4 = por %p1111_p6, %p1110_p2 }
  0x2d   : > { %p1106_p0 = pneg %p1105_p12 }
  0x2f   : > { %p1113_p8 = pnand %p1112_p4, %p1106_p0 }
  0x31   : > { %1116 = shalt.err (!%p1113_p8)
}
  0x32   : > { %s1915_s11 = smov 128   ;;  %s1917_s12 = smov 8  }
  0x33   : > { %1015 = dma.hbm_to_vmem [thread:$0]  (!%p1430_p11), %s1421_s7, 1024, %s1425_s9, [#allocation6], %s1915_s11, %s1915_s11, %s1917_s12  }
  0x34   : > { %s1117_s14 = scalar_lea.hbm %s1437_s13, 1024  ;;  %s1122_s25 = scalar_lea.hbm %s1928_s3, 2048 }
  0x35   : > { %p1118_p10 = scmp.ne.s32.totalorder %s1437_s13, %s1117_s14  ;;  %p1123_p6 = scmp.lt.s32.totalorder %s1437_s13, %s1928_s3 }
  0x36   : > { %p1124_p8 = scmp.lt.s32.totalorder %s1122_s25, %s1117_s14 }
  0x37   : > { %p1120_p2 = pnand %p1118_p10, %p1091_p13 }
  0x38   : > { %p1125_p1 = por %p1124_p8, %p1123_p6 }
  0x39   : > { %p1121_p4 = pneg %p1120_p2 }
  0x3b   : > { %p1126_p3 = pnand %p1125_p1, %p1121_p4 }
  0x3d   : > { %1129 = shalt.err (!%p1126_p3)
}
  0x3e   : > { %s1130_s7 = scalar_lea.vmem %s263_s15, 1024  ;;  %p1138_p12 = scmp.lt.s32.totalorder %s263_s15, %s263_s15 }
  0x3f   : > { %p1131_p5 = scmp.ne.s32.totalorder %s263_s15, %s1130_s7  ;;  %p1139_p0 = scmp.lt.s32.totalorder %s1130_s7, %s1130_s7 }
  0x41   : > { %p1133_p7 = pnand %p1131_p5, %p1091_p13  ;;  %p1140_p10 = por %p1139_p0, %p1138_p12 }
  0x43   : > { %p1134_p9 = pneg %p1133_p7 }
  0x45   : > { %p1141_p2 = pnand %p1140_p10, %p1134_p9 }
  0x47   : > { %1144 = shalt.err (!%p1141_p2)
}
  0x48   : > { %1018 = dma.hbm_to_vmem [thread:$0]  (!%p1430_p11), %s1437_s13, 1024, %s263_s15, [#allocation9], %s1915_s11, %s1915_s11, %s1917_s12  }
  0x49   : > { %s48_s9 = sadd.s32 1, %s1319_s22  ;;  %s59_s8 = sadd.s32 1, %s1311_s20 }
  0x4a   : > { %p50_p13 = scmp.ge.s32.totalorder %s48_s9, 2  ;;  %p66_p4 = scmp.ne.s32.totalorder %s1311_s20, %s1307_s19 }
  0x4b   : > { %p67_p6 = scmp.eq.s32.totalorder %s1323_s23, 0  ;;  %p1033_p8 = scmp.lt.s32.totalorder %s1323_s23, 2 }
  0x4c   : > { %s1946_s9 = smov (%p50_p13, %s48_s9), 0  ;;  %p1929_p3 = scmp.eq.s32.totalorder %s1396_s24, 1 }
  0x4d   : > { %p68_p1 = por %p67_p6, %p66_p4  ;;  %s52_s28 = ssub.s32 %s1319_s22, %s1946_s9 }
  0x4e   : > { %p1498_p5 = por %p1929_p3, %p66_p4  ;;  %s276_s14 = sand.u32 1, %s1311_s20  }
  0x4f   : > { %p57_p7 = scmp.eq.s32.totalorder %s52_s28, 0  ;;  %s1505_s13 = sshll.u32 %s276_s14, 4 }
  0x50   : > { %s996_s15 = sshll.u32 %s1319_s22, 8  ;;  %s1931_s0 = sld [smem:[#allocation19_spill]] }
  0x51   : > { %s1509_s16 = scalar_select %p57_p7, %s1311_s20, %s59_s8  }
  0x52   : > { %s280_s6 = scalar_lea.vmem [#allocation2], %s1505_s13  ;;  %p1517_p11 = pnand %p1033_p8, %p68_p1 }
  0x53   : > { %s290_s7 = sshll.u32 %s280_s6, 4  ;;  %s1933_s1 = sld [smem:[#allocation20_spill]]  ;;  %s291_s7 = int_to_ptr.vmem [resolvable:$true] %s290_s7 }
  0x54   : > { %s277_s8 = scalar_lea.sflag [#allocation3], %s276_s14  ;;  %p1147_p9 = pneg %p1517_p11 }
  0x55   : > { %s1158_s17 = scalar_lea.vmem %s291_s7, 256  ;;  %s1329_s25 = smov [#allocation2]  }
  0x56   : > { %s289_s30 = scalar_lea.hbm %s1931_s0, %s996_s15  ;;  %p1159_p12 = scmp.ne.s32.totalorder %s291_s7, %s1158_s17 }
  0x57   : > { %s1163_s6 = sshll.u32 %s1329_s25, 4  ;;  %s1164_s6 = int_to_ptr.vmem [resolvable:$false] %s1163_s6 }
  0x58   : > { %p1161_p0 = pnand %p1159_p12, %p1147_p9  ;;  %s1165_s0 = scalar_lea.vmem %s1164_s6, 512 }
  0x59   : > { %s1524_s2 = scalar_lea.hbm %s1933_s1, %s996_s15  ;;  %p1166_p2 = scmp.lt.s32.totalorder %s291_s7, %s1164_s6 }
  0x5a   : > { %p1162_p10 = pneg %p1161_p0  ;;  %p1167_p13 = scmp.lt.s32.totalorder %s1165_s0, %s1158_s17 }
  0x5c   : > { %p1168_p4 = por %p1167_p13, %p1166_p2 }
  0x5e   : > { %p1169_p6 = pnand %p1168_p4, %p1162_p10 }
  0x60   : > { %1172 = shalt.err (!%p1169_p6)
}
  0x61   : > { %s1934_s12 = smov 8   ;;  %s1935_s14 = smov 128  }
  0x62   : > { %1022 = dma.hbm_to_vmem [thread:$0]  (!%p1517_p11), %s289_s30, 256, %s291_s7, %s277_s8, %s1935_s14, %s1935_s14, %s1934_s12  }
  0x63   : > { %s304_s15 = scalar_lea.vmem [#allocation5], %s1505_s13  ;;  %s300_s1 = sand.u32 1, %s1323_s23  }
  0x64   : > { %s314_s28 = sshll.u32 %s304_s15, 4  ;;  %s301_s25 = scalar_lea.sflag [#allocation6], %s300_s1  ;;  %s315_s28 = int_to_ptr.vmem [resolvable:$true] %s314_s28 }
  0x65   : > { %s1186_s3 = scalar_lea.vmem %s315_s28, 256  ;;  %s1330_s0 = smov [#allocation5]  }
  0x66   : > { %p1187_p8 = scmp.ne.s32.totalorder %s315_s28, %s1186_s3  ;;  %s1191_s17 = sshll.u32 %s1330_s0, 4  ;;  %s1192_s17 = int_to_ptr.vmem [resolvable:$false] %s1191_s17 }
  0x67   : > { %s1193_s6 = scalar_lea.vmem %s1192_s17, 512  ;;  %p1194_p7 = scmp.lt.s32.totalorder %s315_s28, %s1192_s17 }
  0x68   : > { %p1189_p1 = pnand %p1187_p8, %p1147_p9  ;;  %p1195_p12 = scmp.lt.s32.totalorder %s1193_s6, %s1186_s3 }
  0x6a   : > { %p1190_p3 = pneg %p1189_p1  ;;  %p1196_p0 = por %p1195_p12, %p1194_p7 }
  0x6c   : > { %p1197_p10 = pnand %p1196_p0, %p1190_p3 }
  0x6e   : > { %1200 = shalt.err (!%p1197_p10)
}
  0x6f   : > { %1025 = dma.hbm_to_vmem [thread:$0]  (!%p1517_p11), %s1524_s2, 256, %s315_s28, %s301_s25, %s1935_s14, %s1935_s14, %s1934_s12  }
  0x70   : > { %p1936_p2 = scmp.ne.s32.totalorder %s1925_s29, 0 }
  0x71   : > { %s1550_s1 = sand.u32 (!%p1936_p2), 1, %s1307_s19   ;;  %p1937_p9 = scmp.ne.s32.totalorder (!%p1936_p2), %s1923_s26, 0 }
  0x72   : > { %326 = sbr.rel (%p1936_p2) target bundleno = 196 (0xc4), region = 36  ;;  %s1553_s3 = sshll.u32 (!%p1936_p2), %s1550_s1, 4 }
  0x73   : > { %s329_s13 = scalar_lea.sflag (!%p1936_p2), [#allocation3], %s1550_s1  ;;  %s1557_s30 = scalar_lea.vmem (!%p1936_p2), [#allocation2], %s1553_s3 }
  0x77   : > { %1278 = dma.done.wait (%p1937_p9), %s329_s13, 256  }
  0x78   : > { %1280 = vsyncadd (%p1937_p9), %s329_s13, 4294967040  ;;  %s337_s2 = sand.u32 1, %s1396_s24   ;;  %s1565_s11 = scalar_lea.vmem [#allocation5], %s1553_s3 }
  0x79   : > { %s338_s29 = scalar_lea.sflag [#allocation6], %s337_s2 }
  0x7a   : > { %1282 = dma.done.wait (%p1937_p9), %s338_s29, 256  }
  0x7b   : > { %1284 = vsyncadd (%p1937_p9), %s338_s29, 4294967040 }
  0x7c   : > { %1286 = dma.done.wait (%p1937_p9), [#allocation6], 1024  }
  0x7d   : > { %1288 = vsyncadd (%p1937_p9), [#allocation6], 4294966272 }
  0x7e   : > { %1290 = dma.done.wait (%p1937_p9), [#allocation9], 1024  }
  0x7f   : > { %1292 = vsyncadd (%p1937_p9), [#allocation9], 4294966272  ;;  %v954_v0 = vld [vmem:[%s1557_s30] ss:$0 sm:$0xff]  ;;  %v958_v5 = vld [vmem:[%s1557_s30 + $0x1] ss:$0 sm:$0xff] }
  0x80   : > { %v956_v1 = vld [vmem:[%s1565_s11] ss:$0 sm:$0xff]  ;;  %v960_v6 = vld [vmem:[%s1565_s11 + $0x1] ss:$0 sm:$0xff]  ;;  %v1590_v9 = vld [vmem:[#allocation7 + $0x8] sm:$0xff]  ;;  %s1763_s24 = scalar_lea.vmem [#allocation10], %s1553_s3 }
  0x81   : > { %v1581_v2 = vld [vmem:[#allocation7] sm:$0xff]  ;;  %v1592_v10 = vld [vmem:[#allocation8 + $0x8] sm:$0xff]  ;;  %v444_v13 = vmul.f32 %v958_v5, %v1590_v9  ;;  %v1599_v16 = vld [vmem:[#allocation7 + $0x10] sm:$0xff]  ;;  %v462_v19 = vmul.f32 %v960_v6, %v1590_v9  ;;  %s734_s26 = sshll.u32 %s1763_s24, 4  ;;  %s998_s7 = sshll.u32 %s1315_s21, 8  ;;  %s1788_s26 = int_to_ptr.vmem [resolvable:$true] %s734_s26 }
  0x82   : > { %v1583_v3 = vld [vmem:[#allocation8] sm:$0xff]  ;;  %v404_v4 = vmul.f32 %v954_v0, %v1581_v2  ;;  %v422_v7 = vmul.f32 %v956_v1, %v1581_v2  ;;  %v454_v14 = vmul.f32 %v960_v6, %v1592_v10  ;;  %v1601_v17 = vld [vmem:[#allocation8 + $0x10] sm:$0xff]  ;;  %v460_v18 = vmul.f32 %v958_v5, %v1592_v10  ;;  %v1609_v25 = vld [vmem:[#allocation7 + $0x18] sm:$0xff]  ;;  %s1803_s14 = scalar_lea.hbm %s1910_s4, %s998_s7  ;;  %s1815_s15 = scalar_lea.vmem [#allocation11], %s1553_s3 }
  0x83   : > { %v414_v8 = vmul.f32 %v956_v1, %v1583_v3  ;;  %v962_v11 = vld [vmem:[%s1557_s30 + $0x2] ss:$0 sm:$0xff]  ;;  %v420_v12 = vmul.f32 %v954_v0, %v1583_v3  ;;  %v966_v23 = vld [vmem:[%s1557_s30 + $0x3] ss:$0 sm:$0xff]  ;;  %v1611_v28 = vld [vmem:[#allocation8 + $0x18] sm:$0xff]  ;;  %s713_s28 = scalar_lea.sflag [#allocation4], %s1550_s1 }
  0x84   : > { %v964_v15 = vld [vmem:[%s1565_s11 + $0x2] ss:$0 sm:$0xff]  ;;  %v484_v21 = vmul.f32 %v962_v11, %v1599_v16  ;;  %v968_v24 = vld [vmem:[%s1565_s11 + $0x3] ss:$0 sm:$0xff]  ;;  %v456_v27 = vsub.f32 %v444_v13, %v454_v14  ;;  %v524_v29 = vmul.f32 %v966_v23, %v1609_v25  ;;  %v970_v30 = vld [vmem:[%s1557_s30 + $0x4] ss:$0 sm:$0xff]  ;;  %v464_v32 = vadd.f32 %v462_v19, %v460_v18 }
  0x85   : > { %v416_v20 = vsub.f32 %v404_v4, %v414_v8  ;;  %v494_v22 = vmul.f32 %v964_v15, %v1601_v17  ;;  %v424_v26 = vadd.f32 %v422_v7, %v420_v12  ;;  %v1616_v31 = vld [vmem:[%s1565_s11 + $0x4] ss:$0 sm:$0xff]  ;;  %v500_v33 = vmul.f32 %v962_v11, %v1601_v17  ;;  %v1625_v38 = vld [vmem:[%s1557_s30 + $0x5] ss:$0 sm:$0xff]  ;;  %v1637_v45 = vld [vmem:[#allocation7 + $0x28] sm:$0xff]  ;;  %s1201_s25 = scalar_lea.vmem %s1788_s26, 256 }
  0x86   : > { %v534_v35 = vmul.f32 %v968_v24, %v1611_v28  ;;  %v1620_v36 = vld [vmem:[#allocation7 + $0x20] sm:$0xff]  ;;  %v502_v39 = vmul.f32 %v964_v15, %v1599_v16  ;;  %v1629_v40 = vmul.f32 %v966_v23, %v1611_v28  ;;  %v1639_v46 = vld [vmem:[#allocation8 + $0x28] sm:$0xff]  ;;  %v604_v49 = vmul.f32 %v1625_v38, %v1637_v45  ;;  %v1651_v53 = vld [vmem:[#allocation7 + $0x30] sm:$0xff]  ;;  %p1202_p11 = scmp.ne.s32.totalorder %s1788_s26, %s1201_s25  ;;  %s1331_s0 = smov [#allocation10]  }
  0x87   : > { %v496_v34 = vsub.f32 %v484_v21, %v494_v22  ;;  %v1622_v37 = vld [vmem:[#allocation8 + $0x20] sm:$0xff]  ;;  %v458_v41 = vadd.f32 %v456_v27, %v416_v20  ;;  %v564_v42 = vmul.f32 %v970_v30, %v1620_v36  ;;  %v466_v47 = vadd.f32 %v464_v32, %v424_v26  ;;  %v1653_v57 = vld [vmem:[#allocation8 + $0x30] sm:$0xff]  ;;  %v1666_v0 = vld [vmem:[#allocation7 + $0x38] sm:$0xff]  ;;  %s1205_s17 = sshll.u32 %s1331_s0, 4  ;;  %s1206_s17 = int_to_ptr.vmem [resolvable:$false] %s1205_s17 }
  0x88   : > { %v574_v43 = vmul.f32 %v1616_v31, %v1622_v37  ;;  %v1635_v44 = vld [vmem:[%s1565_s11 + $0x5] ss:$0 sm:$0xff]  ;;  %v536_v48 = vsub.f32 %v524_v29, %v534_v35  ;;  %v1646_v51 = vld [vmem:[%s1557_s30 + $0x6] ss:$0 sm:$0xff]  ;;  %v504_v54 = vadd.f32 %v502_v39, %v500_v33  ;;  %v1658_v59 = vld [vmem:[%s1557_s30 + $0x7] ss:$0 sm:$0xff]  ;;  %v542_v61 = vmul.f32 %v968_v24, %v1609_v25  ;;  %p1203_p13 = pnand %p1202_p11, %p1498_p5  ;;  %p1208_p6 = scmp.lt.s32.totalorder %s1788_s26, %s1206_s17 }
  0x89   : > { %v614_v50 = vmul.f32 %v1635_v44, %v1639_v46  ;;  %v1649_v52 = vld [vmem:[%s1565_s11 + $0x6] ss:$0 sm:$0xff]  ;;  %v498_v55 = vadd.f32 %v496_v34, %v458_v41  ;;  %v644_v58 = vmul.f32 %v1646_v51, %v1651_v53  ;;  %v1661_v60 = vld [vmem:[%s1565_s11 + $0x7] ss:$0 sm:$0xff]  ;;  %v1668_v1 = vld [vmem:[#allocation8 + $0x38] sm:$0xff]  ;;  %v580_v6 = vmul.f32 %v970_v30, %v1622_v37  ;;  %s1207_s6 = scalar_lea.vmem %s1206_s17, 512 }
  0x8a   : > { %v576_v56 = vsub.f32 %v564_v42, %v574_v43  ;;  %v654_v63 = vmul.f32 %v1649_v52, %v1653_v57  ;;  %v1671_v4 = vld [vmem:[%s1557_s30 + $0x8] ss:$0 sm:$0xff]  ;;  %v506_v5 = vadd.f32 %v504_v54, %v466_v47  ;;  %v684_v8 = vmul.f32 %v1658_v59, %v1666_v0  ;;  %v1684_v14 = vld [vmem:[%s1557_s30 + $0x9] ss:$0 sm:$0xff]  ;;  %v1696_v22 = vld [vmem:[%s1557_s30 + $0xa] ss:$0 sm:$0xff]  ;;  %p1204_p4 = pneg %p1203_p13  ;;  %p1209_p8 = scmp.lt.s32.totalorder %s1207_s6, %s1201_s25 }
  0x8b   : > { %v616_v62 = vsub.f32 %v604_v49, %v614_v50  ;;  %v538_v7 = vadd.f32 %v536_v48, %v498_v55  ;;  %v694_v11 = vmul.f32 %v1661_v60, %v1668_v1  ;;  %v1679_v12 = vld [vmem:[%s1565_s11 + $0x8] ss:$0 sm:$0xff]  ;;  %v405_v13 = vmul.f32 %v1671_v4, %v1581_v2  ;;  %v1687_v15 = vld [vmem:[%s1565_s11 + $0x9] ss:$0 sm:$0xff]  ;;  %v1699_v23 = vld [vmem:[%s1565_s11 + $0xa] ss:$0 sm:$0xff] }
  0x8c   : > { %v656_v18 = vsub.f32 %v644_v58, %v654_v63  ;;  %v415_v19 = vmul.f32 %v1679_v12, %v1583_v3  ;;  %v445_v20 = vmul.f32 %v1684_v14, %v1590_v9  ;;  %v455_v21 = vmul.f32 %v1687_v15, %v1592_v10  ;;  %v1702_v24 = vld [vmem:[%s1557_s30 + $0xb] ss:$0 sm:$0xff]  ;;  %v1712_v33 = vld [vmem:[%s1557_s30 + $0xc] ss:$0 sm:$0xff]  ;;  %v1722_v43 = vld [vmem:[%s1557_s30 + $0xd] ss:$0 sm:$0xff]  ;;  %p1210_p1 = por %p1209_p8, %p1208_p6 }
  0x8d   : > { %v578_v26 = vadd.f32 %v576_v56, %v538_v7  ;;  %v696_v27 = vsub.f32 %v684_v8, %v694_v11  ;;  %v485_v29 = vmul.f32 %v1696_v22, %v1599_v16  ;;  %v495_v30 = vmul.f32 %v1699_v23, %v1601_v17  ;;  %v1709_v32 = vld [vmem:[%s1565_s11 + $0xb] ss:$0 sm:$0xff]  ;;  %v1715_v34 = vld [vmem:[%s1565_s11 + $0xc] ss:$0 sm:$0xff]  ;;  %v1725_v47 = vld [vmem:[%s1565_s11 + $0xd] ss:$0 sm:$0xff] }
  0x8e   : > { %v417_v35 = vsub.f32 %v405_v13, %v415_v19  ;;  %v457_v39 = vsub.f32 %v445_v20, %v455_v21  ;;  %v525_v41 = vmul.f32 %v1702_v24, %v1609_v25  ;;  %v535_v42 = vmul.f32 %v1709_v32, %v1611_v28  ;;  %v1728_v48 = vld [vmem:[%s1557_s30 + $0xe] ss:$0 sm:$0xff]  ;;  %v1738_v58 = vld [vmem:[%s1557_s30 + $0xf] ss:$0 sm:$0xff]  ;;  %p1211_p3 = pnand %p1210_p1, %p1204_p4 }
  0x8f   : > { %v618_v49 = vadd.f32 %v616_v62, %v578_v26  ;;  %v497_v50 = vsub.f32 %v485_v29, %v495_v30  ;;  %v565_v54 = vmul.f32 %v1712_v33, %v1620_v36  ;;  %v575_v55 = vmul.f32 %v1715_v34, %v1622_v37  ;;  %v1735_v56 = vld [vmem:[%s1565_s11 + $0xe] ss:$0 sm:$0xff]  ;;  %v1741_v63 = vld [vmem:[%s1565_s11 + $0xf] ss:$0 sm:$0xff] }
  0x90   : > { %v459_v7 = vadd.f32 %v457_v39, %v417_v35  ;;  %v537_v8 = vsub.f32 %v525_v41, %v535_v42  ;;  %v605_v11 = vmul.f32 %v1722_v43, %v1637_v45  ;;  %v615_v62 = vmul.f32 %v1725_v47, %v1639_v46 }
  0x91   : > { %v658_v13 = vadd.f32 %v656_v18, %v618_v49  ;;  %v577_v19 = vsub.f32 %v565_v54, %v575_v55  ;;  %v645_v20 = vmul.f32 %v1728_v48, %v1651_v53  ;;  %v655_v21 = vmul.f32 %v1735_v56, %v1653_v57 }
  0x92   : > { %v499_v26 = vadd.f32 %v497_v50, %v459_v7  ;;  %v617_v29 = vsub.f32 %v605_v11, %v615_v62  ;;  %v685_v30 = vmul.f32 %v1738_v58, %v1666_v0  ;;  %v695_v35 = vmul.f32 %v1741_v63, %v1668_v1 }
  0x93   : > { %v698_v39 = vadd.f32 %v696_v27, %v658_v13  ;;  %v657_v41 = vsub.f32 %v645_v20, %v655_v21  ;;  %v544_v18 = vadd.f32 %v542_v61, %v1629_v40  ;;  %v582_v42 = vmul.f32 %v1616_v31, %v1620_v36 }
  0x94   : > { %v539_v49 = vadd.f32 %v537_v8, %v499_v26  ;;  %v697_v54 = vsub.f32 %v685_v30, %v695_v35  ;;  %v620_v55 = vmul.f32 %v1625_v38, %v1639_v46  ;;  %v622_v50 = vmul.f32 %v1635_v44, %v1637_v45 }
  0x95   : > { %708 = vst [vmem:[%s1763_s24] sm:$0xff] %v698_v39  ;;  %v546_v27 = vadd.f32 %v544_v18, %v506_v5  ;;  %v584_v7 = vadd.f32 %v582_v42, %v580_v6  ;;  %v660_v40 = vmul.f32 %v1646_v51, %v1653_v57  ;;  %v662_v31 = vmul.f32 %v1649_v52, %v1651_v53 }
  0x96   : > { %v579_v61 = vadd.f32 %v577_v19, %v539_v49  ;;  %v624_v8 = vadd.f32 %v622_v50, %v620_v55  ;;  %v700_v38 = vmul.f32 %v1658_v59, %v1668_v1  ;;  %v702_v44 = vmul.f32 %v1661_v60, %v1666_v0 }
  0x97   : > { %v586_v11 = vadd.f32 %v584_v7, %v546_v27  ;;  %v664_v62 = vadd.f32 %v662_v31, %v660_v40  ;;  %v421_v5 = vmul.f32 %v1671_v4, %v1583_v3  ;;  %v423_v51 = vmul.f32 %v1679_v12, %v1581_v2 }
  0x98   : > { %v619_v6 = vadd.f32 %v617_v29, %v579_v61  ;;  %v704_v13 = vadd.f32 %v702_v44, %v700_v38  ;;  %v461_v52 = vmul.f32 %v1684_v14, %v1592_v10  ;;  %v463_v59 = vmul.f32 %v1687_v15, %v1590_v9 }
  0x99   : > { %v626_v60 = vadd.f32 %v624_v8, %v586_v11  ;;  %v425_v19 = vadd.f32 %v423_v51, %v421_v5  ;;  %v501_v20 = vmul.f32 %v1696_v22, %v1601_v17  ;;  %v503_v3 = vmul.f32 %v1699_v23, %v1599_v16 }
  0x9a   : > { %v659_v2 = vadd.f32 %v657_v41, %v619_v6  ;;  %v465_v4 = vadd.f32 %v463_v59, %v461_v52  ;;  %v541_v10 = vmul.f32 %v1702_v24, %v1611_v28  ;;  %v543_v9 = vmul.f32 %v1709_v32, %v1609_v25 }
  0x9b   : > { %v666_v12 = vadd.f32 %v664_v62, %v626_v60  ;;  %v505_v14 = vadd.f32 %v503_v3, %v501_v20  ;;  %v581_v17 = vmul.f32 %v1712_v33, %v1622_v37  ;;  %v583_v16 = vmul.f32 %v1715_v34, %v1620_v36 }
  0x9c   : > { %v699_v28 = vadd.f32 %v697_v54, %v659_v2  ;;  %v467_v25 = vadd.f32 %v465_v4, %v425_v19  ;;  %v545_v15 = vadd.f32 %v543_v9, %v541_v10  ;;  %v621_v22 = vmul.f32 %v1722_v43, %v1639_v46 }
  0x9d   : > { %v706_v37 = vadd.f32 %v704_v13, %v666_v12  ;;  %v623_v23 = vmul.f32 %v1725_v47, %v1637_v45  ;;  %v585_v24 = vadd.f32 %v583_v16, %v581_v17  ;;  %v661_v32 = vmul.f32 %v1728_v48, %v1653_v57 }
  0x9e   : > { %709 = vst [vmem:[%s1763_s24 + $0x8] sm:$0xff] %v699_v28  ;;  %v507_v36 = vadd.f32 %v505_v14, %v467_v25  ;;  %v663_v33 = vmul.f32 %v1735_v56, %v1651_v53 }
  0x9f   : > { %710 = vst [vmem:[%s1815_s15] sm:$0xff] %v706_v37 }
  0xa0   : > { %1214 = shalt.err (!%p1211_p3)
}
  0xa1   : > { %s1215_s3 = scalar_lea.hbm %s1803_s14, 256  ;;  %s1219_s2 = scalar_lea.hbm %s1910_s4, 512 }
  0xa2   : > { %p1216_p7 = scmp.ne.s32.totalorder %s1803_s14, %s1215_s3  ;;  %p1220_p10 = scmp.lt.s32.totalorder %s1803_s14, %s1910_s4 }
  0xa3   : > { %p1221_p2 = scmp.lt.s32.totalorder %s1219_s2, %s1215_s3 }
  0xa4   : > { %p1217_p12 = pnand %p1216_p7, %p1498_p5 }
  0xa5   : > { %p1222_p9 = por %p1221_p2, %p1220_p10 }
  0xa6   : > { %p1218_p0 = pneg %p1217_p12 }
  0xa8   : > { %p1223_p11 = pnand %p1222_p9, %p1218_p0 }
  0xaa   : > { %1226 = shalt.err (!%p1223_p11)
}
  0xab   : > { %s1332_s24 = smov 128   ;;  %s1333_s8 = smov 8   ;;  %v547_v45 = vadd.f32 %v545_v15, %v507_v36  ;;  %v625_v46 = vadd.f32 %v623_v23, %v621_v22  ;;  %v701_v53 = vmul.f32 %v1738_v58, %v1668_v1  ;;  %v703_v57 = vmul.f32 %v1741_v63, %v1666_v0 }
  0xac   : > { %1008 = dma.vmem_to_hbm [thread:$0]  (%p1498_p5), %s1788_s26, 256, %s1803_s14, %s713_s28, %s1332_s24, %s1332_s24, %s1333_s8   ;;  %v665_v43 = vadd.f32 %v663_v33, %v661_v32 }
  0xad   : > { %v587_v34 = vadd.f32 %v585_v24, %v547_v45  ;;  %s753_s12 = sshll.u32 %s1815_s15, 4  ;;  %v705_v48 = vadd.f32 %v703_v57, %v701_v53  ;;  %s1856_s28 = scalar_lea.hbm %s1911_s5, %s998_s7  ;;  %s1849_s12 = int_to_ptr.vmem [resolvable:$true] %s753_s12 }
  0xae   : > { %s718_s25 = scalar_lea.sflag [#allocation12], %s1550_s1  ;;  %s1227_s0 = scalar_lea.vmem %s1849_s12, 256 }
  0xaf   : > { %v627_v47 = vadd.f32 %v625_v46, %v587_v34  ;;  %p1228_p13 = scmp.ne.s32.totalorder %s1849_s12, %s1227_s0  ;;  %s1334_s17 = smov [#allocation11]  }
  0xb0   : > { %s1231_s6 = sshll.u32 %s1334_s17, 4  ;;  %s1232_s6 = int_to_ptr.vmem [resolvable:$false] %s1231_s6 }
  0xb1   : > { %v667_v56 = vadd.f32 %v665_v43, %v627_v47  ;;  %p1229_p4 = pnand %p1228_p13, %p1498_p5  ;;  %s1233_s3 = scalar_lea.vmem %s1232_s6, 512 }
  0xb2   : > { %p1234_p8 = scmp.lt.s32.totalorder %s1849_s12, %s1232_s6  ;;  %p1235_p1 = scmp.lt.s32.totalorder %s1233_s3, %s1227_s0 }
  0xb3   : > { %v707_v21 = vadd.f32 %v705_v48, %v667_v56  ;;  %p1230_p6 = pneg %p1229_p4 }
  0xb4   : > { %p1236_p3 = por %p1235_p1, %p1234_p8 }
  0xb5   : > { %711 = vst [vmem:[%s1815_s15 + $0x8] sm:$0xff] %v707_v21 }
  0xb6   : > { %p1237_p7 = pnand %p1236_p3, %p1230_p6 }
  0xb8   : > { %1240 = shalt.err (!%p1237_p7)
}
  0xb9   : > { %s1241_s21 = scalar_lea.hbm %s1856_s28, 256  ;;  %s1245_s15 = scalar_lea.hbm %s1911_s5, 512 }
  0xba   : > { %p1242_p12 = scmp.ne.s32.totalorder %s1856_s28, %s1241_s21  ;;  %p1246_p2 = scmp.lt.s32.totalorder %s1856_s28, %s1911_s5 }
  0xbb   : > { %p1247_p9 = scmp.lt.s32.totalorder %s1245_s15, %s1241_s21 }
  0xbc   : > { %p1243_p0 = pnand %p1242_p12, %p1498_p5 }
  0xbd   : > { %p1248_p11 = por %p1247_p9, %p1246_p2 }
  0xbe   : > { %p1244_p10 = pneg %p1243_p0 }
  0xc0   : > { %p1249_p13 = pnand %p1248_p11, %p1244_p10 }
  0xc2   : > { %1252 = shalt.err (!%p1249_p13)
}
  0xc3   : > { %1009 = dma.vmem_to_hbm [thread:$0]  (%p1498_p5), %s1849_s12, 256, %s1856_s28, %s718_s25, %s1332_s24, %s1332_s24, %s1333_s8  }
  0xc4 PF: > { %s768_s2 = sand.u32 1, %s1303_s18   ;;  %p1938_p4 = scmp.ne.s32.totalorder %s1924_s27, 0 }
  0xc5   : > { %p1939_p6 = scmp.ge.s32.totalorder %s1323_s23, 2  ;;  %s769_s29 = scalar_lea.sflag [#allocation4], %s768_s2 }
  0xc7   : > { %p1027_p8 = pnand %p1939_p6, %p1938_p4 }
  0xc9   : > { %p1028_p1 = pneg %p1027_p8 }
  0xcb   : > { %1294 = dma.done.wait (%p1028_p1), %s769_s29, 256  }
  0xcc   : > { %1296 = vsyncadd (%p1028_p1), %s769_s29, 4294967040  ;;  %s778_s11 = scalar_lea.sflag [#allocation12], %s768_s2 }
  0xcd   : > { %1298 = dma.done.wait (%p1028_p1), %s778_s11, 256  }
  0xce   : > { %1300 = vsyncadd (%p1028_p1), %s778_s11, 4294967040  ;;  %s29_s23 = sadd.s32 1, %s1323_s23   ;;  %s1940_s18 = smov %s1307_s19 }
  0xcf   : > { %p26_p3 = scmp.ge.s32.totalorder %s29_s23, 4   ;;  %s1941_s19 = smov %s1311_s20 }
  0xd0   : > { %s1942_s20 = smov %s1509_s16  ;;  %s1943_s21 = smov %s1319_s22 }
  0xd1   : > { %s1944_s22 = smov %s1946_s9  ;;  %28 = sbr.rel (!%p26_p3) target bundleno = 16 (0x10), region = 135 }
  0xd6   :  { %783 = vsyncpa [#allocation3], 1 }
  0xd7   :  { %785 = vsyncpa [#allocation3 + $0x1], 1 }
  0xd8   :  { %786 = vsyncpa [#allocation6], 1 }
  0xd9   :  { %788 = vsyncpa [#allocation6 + $0x1], 1 }
  0xda   :  { %789 = vsyncpa [#allocation9], 1 }
  0xdb   :  { %790 = vsyncpa [#allocation4], 1 }
  0xdc   :  { %792 = vsyncpa [#allocation4 + $0x1], 1 }
  0xdd   :  { %793 = vsyncpa [#allocation12], 1 }
  0xde   :  { %795 = vsyncpa [#allocation12 + $0x1], 1 }

// kernel: tpu_custom_call.1
= control target key start
LH: loop header
LB: loop body
LE: loop exit
PB: predicated region body
PF: predicated region fallthrough
CT: control target
= control target key end

     0   :  { %s1961_s0 = inlined_call_operand.hbm [shape: f32[2,2,8,128], index: 0, kind: input, shape index: {}]   ;;  %s1962_s1 = inlined_call_operand.hbm [shape: f32[2,2,8,128], index: 1, kind: input, shape index: {}]   ;;  %s1963_s2 = inlined_call_operand.hbm [shape: f32[2,8,8,128], index: 2, kind: input, shape index: {}]   ;;  %s1964_s3 = inlined_call_operand.hbm [shape: f32[2,8,8,128], index: 3, kind: input, shape index: {}]   ;;  %s1965_s4 = inlined_call_operand.hbm [shape: f32[2,2,8,128], index: 4, kind: output, shape index: {0}]   ;;  %s1966_s5 = inlined_call_operand.hbm [shape: f32[2,2,8,128], index: 5, kind: output, shape index: {1}]  }
   0x1   :  { %1974 = sst [smem:[#allocation23_spill]] %s1961_s0 }
   0x2   :  { %1975 = sst [smem:[#allocation24_spill]] %s1962_s1 }
   0x3   :  { %11 = vsyncpa [#allocation3], 0 }
   0x4   :  { %13 = vsyncpa [#allocation3 + $0x1], 0 }
   0x5   :  { %14 = vsyncpa [#allocation6], 0 }
   0x6   :  { %16 = vsyncpa [#allocation6 + $0x1], 0 }
   0x7   :  { %17 = vsyncpa [#allocation9], 0 }
   0x8   :  { %19 = vsyncpa [#allocation9 + $0x1], 0 }
   0x9   :  { %20 = vsyncpa [#allocation4], 0 }
   0xa   :  { %22 = vsyncpa [#allocation4 + $0x1], 0 }
   0xb   :  { %23 = vsyncpa [#allocation12], 0 }
   0xc   :  { %25 = vsyncpa [#allocation12 + $0x1], 0  ;;  %s1428_s18 = smov 0   ;;  %s1430_s19 = smov 0  }
   0xd   :  { %s1432_s20 = smov 0   ;;  %s1434_s21 = smov 0  }
   0xe   :  { %s1436_s22 = smov 0   ;;  %s1438_s23 = smov 0  }
   0xf LB: > { %1976 = sst [smem:[#allocation18_spill]] %s1374_s20  ;;  %s1459_s24 = sadd.s32 4294967295, %s1386_s23   ;;  %s1386_s23 = sphi %s1438_s23, %s31_s23   ;;  %s1382_s22 = sphi %s1436_s22, %s1999_s22   ;;  %s1378_s21 = sphi %s1434_s21, %s1998_s21   ;;  %s1374_s20 = sphi %s1432_s20, %s1994_s20   ;;  %s1370_s19 = sphi %s1430_s19, %s1997_s19   ;;  %s1366_s18 = sphi %s1428_s18, %s1996_s18  }
  0x10   : > { %1977 = sst [smem:[#allocation19_spill]] %s1386_s23  ;;  %s988_s25 = sadd.s32 4294967294, %s1386_s23  }
  0x11   : > { %s50_s26 = sadd.s32 1, %s1382_s22  ;;  %s61_s27 = sadd.s32 1, %s1374_s20 }
  0x12   : > { %p52_p0 = scmp.ge.s32.totalorder %s50_s26, 2  ;;  %p68_p1 = scmp.ne.s32.totalorder %s1374_s20, %s1370_s19 }
  0x13   : > { %p69_p2 = scmp.eq.s32.totalorder %s1386_s23, 0  ;;  %p74_p3 = scmp.ne.s32.totalorder %s1370_s19, %s1366_s18 }
  0x14   : > { %s2001_s26 = smov (%p52_p0, %s50_s26), 0  ;;  %p75_p5 = scmp.eq.s32.totalorder %s1459_s24, 0 }
  0x15   : > { %1978 = sst [smem:[#allocation20_spill]] %s2001_s26  ;;  %p1471_p4 = por %p69_p2, %p68_p1 }
  0x16   : > { %s54_s29 = ssub.s32 %s1382_s22, %s2001_s26  ;;  %p188_p6 = scmp.eq.s32.totalorder %s1459_s24, 1 }
  0x17   : > { %p59_p7 = scmp.eq.s32.totalorder %s54_s29, 0  ;;  %p1479_p8 = por %p75_p5, %p74_p3 }
  0x18   : > { %p1483_p9 = por %p188_p6, %p68_p1  ;;  %p194_p10 = scmp.eq.s32.totalorder %s988_s25, 1 }
  0x19   : > { %s1488_s7 = scalar_select %p59_p7, %s1374_s20, %s61_s27  }
  0x1a   : > { %p1490_p11 = por %p194_p10, %p74_p3  ;;  %p1102_p13 = scmp.lt.s32.totalorder %s1386_s23, 2 }
  0x1b   : > { %1982 = sst [smem:[#allocation21_spill]] %s1488_s7  ;;  %s1497_s9 = sand.u32 1, %s1374_s20  }
  0x1c   : > { %s1983_s8 = scalar_select %p1490_p11, 1, 0 }
  0x1d   : > { %s991_s10 = sshll.u32 %s1497_s9, 4  ;;  %s1064_s11 = sshll.u32 %s1382_s22, 8 }
  0x1e   : > { %1984 = sst [smem:[#allocation22_spill]] %s1983_s8  ;;  %p1503_p0 = pnand %p1102_p13, %p1471_p4 }
  0x1f   : > { %s268_s13 = sand.u32 1, %s1386_s23   ;;  %s1986_s1 = sld [smem:[#allocation24_spill]] }
  0x20   : > { %s272_s17 = scalar_lea.vmem [#allocation5], %s991_s10  ;;  %p1003_p1 = scmp.ge.s32.totalorder %s1386_s23, 1 }
  0x21   : > { %s282_s25 = sshll.u32 %s272_s17, 4  ;;  %p334_p2 = scmp.lt.s32.totalorder %s1386_s23, 3  ;;  %s283_s25 = int_to_ptr.vmem [resolvable:$true] %s282_s25 }
  0x22   : > { %s1517_s27 = scalar_lea.sflag [#allocation6], %s268_s13  ;;  %p1158_p3 = pneg %p1503_p0 }
  0x23   : > { %s1169_s28 = scalar_lea.vmem %s283_s25, 256  ;;  %s1388_s29 = smov [#allocation5]  }
  0x24   : > { %p1170_p4 = scmp.ne.s32.totalorder %s283_s25, %s1169_s28  ;;  %s1174_s26 = sshll.u32 %s1388_s29, 4  ;;  %s1175_s26 = int_to_ptr.vmem [resolvable:$false] %s1174_s26 }
  0x25   : > { %s281_s16 = scalar_lea.hbm %s1986_s1, %s1064_s11  ;;  %s1176_s14 = scalar_lea.vmem %s1175_s26, 512 }
  0x26   : > { %p1172_p5 = pnand %p1170_p4, %p1158_p3  ;;  %p1177_p7 = scmp.lt.s32.totalorder %s283_s25, %s1175_s26 }
  0x27   : > { %p1178_p10 = scmp.lt.s32.totalorder %s1176_s14, %s1169_s28 }
  0x28   : > { %p1173_p6 = pneg %p1172_p5 }
  0x29   : > { %p1179_p13 = por %p1178_p10, %p1177_p7 }
  0x2b   : > { %p1180_p12 = pnand %p1179_p13, %p1173_p6 }
  0x2d   : > { %1183 = shalt.err (!%p1180_p12)
}
  0x2e   : > { %s1970_s15 = smov 128   ;;  %s1390_s13 = smov 8  }
  0x2f   : > { %1088 = dma.hbm_to_vmem [thread:$0]  (!%p1503_p0), %s281_s16, 256, %s283_s25, %s1517_s27, %s1970_s15, %s1970_s15, %s1390_s13  }
  0x30   : > { %p1534_p4 = pnand %p1003_p1, %p334_p2  ;;  %s1988_s0 = sld [smem:[#allocation23_spill]] }
  0x31   : > { %s248_s14 = scalar_lea.vmem [#allocation2], %s991_s10  ;;  %s997_s7 = sshll.u32 %s1497_s9, 6 }
  0x32   : > { %s258_s1 = sshll.u32 %s248_s14, 4  ;;  %s245_s20 = scalar_lea.sflag [#allocation3], %s1497_s9  ;;  %s259_s1 = int_to_ptr.vmem [resolvable:$true] %s258_s1 }
  0x33   : > { %s1197_s8 = scalar_lea.vmem %s259_s1, 256  ;;  %s1391_s16 = smov [#allocation2]  }
  0x34   : > { %p1198_p12 = scmp.ne.s32.totalorder %s259_s1, %s1197_s8  ;;  %s1202_s25 = sshll.u32 %s1391_s16, 4  ;;  %s1203_s25 = int_to_ptr.vmem [resolvable:$false] %s1202_s25 }
  0x35   : > { %s1204_s15 = scalar_lea.vmem %s1203_s25, 512  ;;  %p1205_p2 = scmp.lt.s32.totalorder %s259_s1, %s1203_s25 }
  0x36   : > { %s257_s29 = scalar_lea.hbm %s1988_s0, %s1064_s11  ;;  %p1200_p5 = pnand %p1198_p12, %p1158_p3 }
  0x37   : > { %p1206_p6 = scmp.lt.s32.totalorder %s1204_s15, %s1197_s8 }
  0x38   : > { %p1201_p1 = pneg %p1200_p5 }
  0x39   : > { %p1207_p7 = por %p1206_p6, %p1205_p2 }
  0x3b   : > { %p1208_p10 = pnand %p1207_p7, %p1201_p1 }
  0x3d   : > { %1211 = shalt.err (!%p1208_p10)
}
  0x3e   : > { %s1989_s10 = smov 128   ;;  %s1066_s11 = sshll.u32 %s1382_s22, 10 }
  0x3f   : > { %1085 = dma.hbm_to_vmem [thread:$0]  (!%p1503_p0), %s257_s29, 256, %s259_s1, %s245_s20, %s1989_s10, %s1989_s10, %s1390_s13  }
  0x40   : > { %s296_s17 = scalar_lea.vmem [#allocation7], %s997_s7  ;;  %s303_s8 = scalar_lea.hbm %s1963_s2, %s1066_s11 }
  0x41   : > { %s304_s28 = sshll.u32 %s296_s17, 4  ;;  %s1392_s25 = smov [#allocation7]   ;;  %s305_s28 = int_to_ptr.vmem [resolvable:$true] %s304_s28 }
  0x42   : > { %s1225_s15 = scalar_lea.vmem %s305_s28, 1024  ;;  %s1230_s0 = sshll.u32 %s1392_s25, 4  ;;  %s1231_s0 = int_to_ptr.vmem [resolvable:$false] %s1230_s0 }
  0x43   : > { %p1226_p13 = scmp.ne.s32.totalorder %s305_s28, %s1225_s15  ;;  %s1232_s23 = scalar_lea.vmem %s1231_s0, 2048 }
  0x44   : > { %p1233_p1 = scmp.lt.s32.totalorder %s305_s28, %s1231_s0  ;;  %p1234_p2 = scmp.lt.s32.totalorder %s1232_s23, %s1225_s15 }
  0x45   : > { %p1228_p12 = pnand %p1226_p13, %p1158_p3 }
  0x46   : > { %p1235_p6 = por %p1234_p2, %p1233_p1 }
  0x47   : > { %p1229_p5 = pneg %p1228_p12 }
  0x49   : > { %p1236_p7 = pnand %p1235_p6, %p1229_p5 }
  0x4b   : > { %1239 = shalt.err (!%p1236_p7)
}
  0x4c   : > { %1091 = dma.hbm_to_vmem [thread:$0]  (!%p1503_p0), %s303_s8, 1024, %s305_s28, %s1517_s27, %s1989_s10, %s1989_s10, %s1390_s13  }
  0x4d   : > { %s325_s29 = scalar_lea.hbm %s1964_s3, %s1066_s11  ;;  %s318_s0 = scalar_lea.vmem [#allocation8], %s997_s7 }
  0x4e   : > { %s326_s23 = sshll.u32 %s318_s0, 4  ;;  %s315_s17 = scalar_lea.sflag [#allocation9], %s1497_s9  ;;  %s327_s23 = int_to_ptr.vmem [resolvable:$true] %s326_s23 }
  0x4f   : > { %s1253_s14 = scalar_lea.vmem %s327_s23, 1024  ;;  %s1393_s16 = smov [#allocation8]  }
  0x50   : > { %p1254_p10 = scmp.ne.s32.totalorder %s327_s23, %s1253_s14  ;;  %s1258_s15 = sshll.u32 %s1393_s16, 4  ;;  %s1259_s15 = int_to_ptr.vmem [resolvable:$false] %s1258_s15 }
  0x51   : > { %s1260_s25 = scalar_lea.vmem %s1259_s15, 2048  ;;  %p1261_p5 = scmp.lt.s32.totalorder %s327_s23, %s1259_s15 }
  0x52   : > { %p1256_p13 = pnand %p1254_p10, %p1158_p3  ;;  %p1262_p1 = scmp.lt.s32.totalorder %s1260_s25, %s1253_s14 }
  0x54   : > { %p1257_p12 = pneg %p1256_p13  ;;  %p1263_p2 = por %p1262_p1, %p1261_p5 }
  0x56   : > { %p1264_p6 = pnand %p1263_p2, %p1257_p12 }
  0x58   : > { %1267 = shalt.err (!%p1264_p6)
}
  0x59   : > { %1094 = dma.hbm_to_vmem [thread:$0]  (!%p1503_p0), %s325_s29, 1024, %s327_s23, %s315_s17, %s1989_s10, %s1989_s10, %s1390_s13  }
  0x5a   : > { %338 = sbr.rel (%p1534_p4) target bundleno = 171 (0xab), region = 36  ;;  %s1587_s7 = sand.u32 (!%p1534_p4), 1, %s1370_s19  }
  0x5b   : > { %s1590_s9 = sshll.u32 (!%p1534_p4), %s1587_s7, 4  ;;  %s341_s27 = scalar_lea.sflag (!%p1534_p4), [#allocation3], %s1587_s7 }
  0x5c   : > { %s1594_s11 = scalar_lea.vmem (!%p1534_p4), [#allocation2], %s1590_s9 }
  0x5f   : > { %1345 = dma.done.wait (%p1479_p8), %s341_s27, 256  }
  0x60   : > { %1347 = vsyncadd (%p1479_p8), %s341_s27, 4294967040  ;;  %s349_s12 = sand.u32 1, %s1459_s24   ;;  %s1602_s26 = scalar_lea.vmem [#allocation5], %s1590_s9 }
  0x61   : > { %s350_s13 = scalar_lea.sflag [#allocation6], %s349_s12 }
  0x62   : > { %1349 = dma.done.wait (%p1479_p8), %s350_s13, 1280  }
  0x63   : > { %1351 = vsyncadd (%p1479_p8), %s350_s13, 4294966016  ;;  %s1006_s10 = sshll.u32 %s1587_s7, 6  ;;  %s368_s8 = scalar_lea.sflag [#allocation9], %s1587_s7 }
  0x64   : > { %s1609_s28 = scalar_lea.vmem [#allocation7], %s1006_s10  ;;  %s1612_s1 = scalar_lea.vmem [#allocation8], %s1006_s10 }
  0x65   : > { %1353 = dma.done.wait (%p1479_p8), %s368_s8, 1024  }
  0x66   : > { %1355 = vsyncadd (%p1479_p8), %s368_s8, 4294966272  ;;  %v1010_v0 = vld [vmem:[%s1594_s11] ss:$0 sm:$0xff]  ;;  %v1016_v5 = vld [vmem:[%s1594_s11 + $0x1] ss:$0 sm:$0xff]  ;;  %s1818_s24 = scalar_lea.vmem [#allocation10], %s1590_s9 }
  0x67   : > { %v1012_v1 = vld [vmem:[%s1602_s26] ss:$0 sm:$0xff]  ;;  %v1018_v6 = vld [vmem:[%s1602_s26 + $0x1] ss:$0 sm:$0xff]  ;;  %v1632_v9 = vld [vmem:[%s1609_s28 + $0x8] sm:$0xff]  ;;  %s766_s30 = sshll.u32 %s1818_s24, 4  ;;  %s1843_s30 = int_to_ptr.vmem [resolvable:$true] %s766_s30 }
  0x68   : > { %v1621_v2 = vld [vmem:[%s1609_s28] sm:$0xff]  ;;  %v1635_v10 = vld [vmem:[%s1612_s1 + $0x8] sm:$0xff]  ;;  %v476_v13 = vmul.f32 %v1016_v5, %v1632_v9  ;;  %v1643_v16 = vld [vmem:[%s1609_s28 + $0x10] sm:$0xff]  ;;  %v494_v19 = vmul.f32 %v1018_v6, %v1632_v9  ;;  %s1068_s20 = sshll.u32 %s1378_s21, 8  ;;  %s1870_s17 = scalar_lea.vmem [#allocation11], %s1590_s9 }
  0x69   : > { %v1624_v3 = vld [vmem:[%s1612_s1] sm:$0xff]  ;;  %v436_v4 = vmul.f32 %v1010_v0, %v1621_v2  ;;  %v454_v7 = vmul.f32 %v1012_v1, %v1621_v2  ;;  %v486_v14 = vmul.f32 %v1018_v6, %v1635_v10  ;;  %v1646_v17 = vld [vmem:[%s1612_s1 + $0x10] sm:$0xff]  ;;  %v492_v18 = vmul.f32 %v1016_v5, %v1635_v10  ;;  %v1655_v25 = vld [vmem:[%s1609_s28 + $0x18] sm:$0xff]  ;;  %s1858_s23 = scalar_lea.hbm %s1965_s4, %s1068_s20  ;;  %s745_s14 = scalar_lea.sflag [#allocation4], %s1587_s7 }
  0x6a   : > { %v446_v8 = vmul.f32 %v1012_v1, %v1624_v3  ;;  %v1022_v11 = vld [vmem:[%s1594_s11 + $0x2] ss:$0 sm:$0xff]  ;;  %v452_v12 = vmul.f32 %v1010_v0, %v1624_v3  ;;  %v1028_v23 = vld [vmem:[%s1594_s11 + $0x3] ss:$0 sm:$0xff]  ;;  %v1658_v28 = vld [vmem:[%s1612_s1 + $0x18] sm:$0xff]  ;;  %s1268_s16 = scalar_lea.vmem %s1843_s30, 256 }
  0x6b   : > { %v1024_v15 = vld [vmem:[%s1602_s26 + $0x2] ss:$0 sm:$0xff]  ;;  %v516_v21 = vmul.f32 %v1022_v11, %v1643_v16  ;;  %v1030_v24 = vld [vmem:[%s1602_s26 + $0x3] ss:$0 sm:$0xff]  ;;  %v488_v27 = vsub.f32 %v476_v13, %v486_v14  ;;  %v556_v29 = vmul.f32 %v1028_v23, %v1655_v25  ;;  %v1034_v30 = vld [vmem:[%s1594_s11 + $0x4] ss:$0 sm:$0xff]  ;;  %v496_v32 = vadd.f32 %v494_v19, %v492_v18  ;;  %p1269_p8 = scmp.ne.s32.totalorder %s1843_s30, %s1268_s16 }
  0x6c   : > { %v448_v20 = vsub.f32 %v436_v4, %v446_v8  ;;  %v526_v22 = vmul.f32 %v1024_v15, %v1646_v17  ;;  %v456_v26 = vadd.f32 %v454_v7, %v452_v12  ;;  %v1663_v31 = vld [vmem:[%s1602_s26 + $0x4] ss:$0 sm:$0xff]  ;;  %v532_v33 = vmul.f32 %v1022_v11, %v1646_v17  ;;  %v1674_v38 = vld [vmem:[%s1594_s11 + $0x5] ss:$0 sm:$0xff]  ;;  %v1687_v45 = vld [vmem:[%s1609_s28 + $0x28] sm:$0xff]  ;;  %s1394_s15 = smov [#allocation10]  }
  0x6d   : > { %v566_v35 = vmul.f32 %v1030_v24, %v1658_v28  ;;  %v1668_v36 = vld [vmem:[%s1609_s28 + $0x20] sm:$0xff]  ;;  %v534_v39 = vmul.f32 %v1024_v15, %v1643_v16  ;;  %v1678_v40 = vmul.f32 %v1028_v23, %v1658_v28  ;;  %v1690_v46 = vld [vmem:[%s1612_s1 + $0x28] sm:$0xff]  ;;  %v636_v49 = vmul.f32 %v1674_v38, %v1687_v45  ;;  %v1703_v53 = vld [vmem:[%s1609_s28 + $0x30] sm:$0xff]  ;;  %p1270_p0 = pnand %p1269_p8, %p1483_p9  ;;  %s1272_s25 = sshll.u32 %s1394_s15, 4  ;;  %s1273_s25 = int_to_ptr.vmem [resolvable:$false] %s1272_s25 }
  0x6e   : > { %v528_v34 = vsub.f32 %v516_v21, %v526_v22  ;;  %v1671_v37 = vld [vmem:[%s1612_s1 + $0x20] sm:$0xff]  ;;  %v490_v41 = vadd.f32 %v488_v27, %v448_v20  ;;  %v596_v42 = vmul.f32 %v1034_v30, %v1668_v36  ;;  %v498_v47 = vadd.f32 %v496_v32, %v456_v26  ;;  %v1706_v57 = vld [vmem:[%s1612_s1 + $0x30] sm:$0xff]  ;;  %v1720_v0 = vld [vmem:[%s1609_s28 + $0x38] sm:$0xff]  ;;  %s1274_s27 = scalar_lea.vmem %s1273_s25, 512  ;;  %p1275_p4 = scmp.lt.s32.totalorder %s1843_s30, %s1273_s25 }
  0x6f   : > { %v606_v43 = vmul.f32 %v1663_v31, %v1671_v37  ;;  %v1684_v44 = vld [vmem:[%s1602_s26 + $0x5] ss:$0 sm:$0xff]  ;;  %v568_v48 = vsub.f32 %v556_v29, %v566_v35  ;;  %v1697_v51 = vld [vmem:[%s1594_s11 + $0x6] ss:$0 sm:$0xff]  ;;  %v536_v54 = vadd.f32 %v534_v39, %v532_v33  ;;  %v1711_v59 = vld [vmem:[%s1594_s11 + $0x7] ss:$0 sm:$0xff]  ;;  %v574_v61 = vmul.f32 %v1030_v24, %v1655_v25  ;;  %p1271_p3 = pneg %p1270_p0  ;;  %p1276_p7 = scmp.lt.s32.totalorder %s1274_s27, %s1268_s16 }
  0x70   : > { %v646_v50 = vmul.f32 %v1684_v44, %v1690_v46  ;;  %v1700_v52 = vld [vmem:[%s1602_s26 + $0x6] ss:$0 sm:$0xff]  ;;  %v530_v55 = vadd.f32 %v528_v34, %v490_v41  ;;  %v676_v58 = vmul.f32 %v1697_v51, %v1703_v53  ;;  %v1714_v60 = vld [vmem:[%s1602_s26 + $0x7] ss:$0 sm:$0xff]  ;;  %v1723_v1 = vld [vmem:[%s1612_s1 + $0x38] sm:$0xff]  ;;  %v612_v6 = vmul.f32 %v1034_v30, %v1671_v37 }
  0x71   : > { %v608_v56 = vsub.f32 %v596_v42, %v606_v43  ;;  %v686_v63 = vmul.f32 %v1700_v52, %v1706_v57  ;;  %v1726_v4 = vld [vmem:[%s1594_s11 + $0x8] ss:$0 sm:$0xff]  ;;  %v538_v5 = vadd.f32 %v536_v54, %v498_v47  ;;  %v716_v8 = vmul.f32 %v1711_v59, %v1720_v0  ;;  %v1739_v14 = vld [vmem:[%s1594_s11 + $0x9] ss:$0 sm:$0xff]  ;;  %v1751_v22 = vld [vmem:[%s1594_s11 + $0xa] ss:$0 sm:$0xff]  ;;  %p1277_p10 = por %p1276_p7, %p1275_p4 }
  0x72   : > { %v648_v62 = vsub.f32 %v636_v49, %v646_v50  ;;  %v570_v7 = vadd.f32 %v568_v48, %v530_v55  ;;  %v726_v11 = vmul.f32 %v1714_v60, %v1723_v1  ;;  %v1734_v12 = vld [vmem:[%s1602_s26 + $0x8] ss:$0 sm:$0xff]  ;;  %v437_v13 = vmul.f32 %v1726_v4, %v1621_v2  ;;  %v1742_v15 = vld [vmem:[%s1602_s26 + $0x9] ss:$0 sm:$0xff]  ;;  %v1754_v23 = vld [vmem:[%s1602_s26 + $0xa] ss:$0 sm:$0xff] }
  0x73   : > { %v688_v18 = vsub.f32 %v676_v58, %v686_v63  ;;  %v447_v19 = vmul.f32 %v1734_v12, %v1624_v3  ;;  %v477_v20 = vmul.f32 %v1739_v14, %v1632_v9  ;;  %v487_v21 = vmul.f32 %v1742_v15, %v1635_v10  ;;  %v1757_v24 = vld [vmem:[%s1594_s11 + $0xb] ss:$0 sm:$0xff]  ;;  %v1767_v33 = vld [vmem:[%s1594_s11 + $0xc] ss:$0 sm:$0xff]  ;;  %v1777_v43 = vld [vmem:[%s1594_s11 + $0xd] ss:$0 sm:$0xff]  ;;  %p1278_p13 = pnand %p1277_p10, %p1271_p3 }
  0x74   : > { %v610_v26 = vadd.f32 %v608_v56, %v570_v7  ;;  %v728_v27 = vsub.f32 %v716_v8, %v726_v11  ;;  %v517_v29 = vmul.f32 %v1751_v22, %v1643_v16  ;;  %v527_v30 = vmul.f32 %v1754_v23, %v1646_v17  ;;  %v1764_v32 = vld [vmem:[%s1602_s26 + $0xb] ss:$0 sm:$0xff]  ;;  %v1770_v34 = vld [vmem:[%s1602_s26 + $0xc] ss:$0 sm:$0xff]  ;;  %v1780_v47 = vld [vmem:[%s1602_s26 + $0xd] ss:$0 sm:$0xff] }
  0x75   : > { %v449_v35 = vsub.f32 %v437_v13, %v447_v19  ;;  %v489_v39 = vsub.f32 %v477_v20, %v487_v21  ;;  %v557_v41 = vmul.f32 %v1757_v24, %v1655_v25  ;;  %v567_v42 = vmul.f32 %v1764_v32, %v1658_v28  ;;  %v1783_v48 = vld [vmem:[%s1594_s11 + $0xe] ss:$0 sm:$0xff]  ;;  %v1793_v58 = vld [vmem:[%s1594_s11 + $0xf] ss:$0 sm:$0xff] }
  0x76   : > { %v650_v49 = vadd.f32 %v648_v62, %v610_v26  ;;  %v529_v50 = vsub.f32 %v517_v29, %v527_v30  ;;  %v597_v54 = vmul.f32 %v1767_v33, %v1668_v36  ;;  %v607_v55 = vmul.f32 %v1770_v34, %v1671_v37  ;;  %v1790_v56 = vld [vmem:[%s1602_s26 + $0xe] ss:$0 sm:$0xff]  ;;  %v1796_v63 = vld [vmem:[%s1602_s26 + $0xf] ss:$0 sm:$0xff] }
  0x77   : > { %v491_v7 = vadd.f32 %v489_v39, %v449_v35  ;;  %v569_v8 = vsub.f32 %v557_v41, %v567_v42  ;;  %v637_v11 = vmul.f32 %v1777_v43, %v1687_v45  ;;  %v647_v62 = vmul.f32 %v1780_v47, %v1690_v46 }
  0x78   : > { %v690_v13 = vadd.f32 %v688_v18, %v650_v49  ;;  %v609_v19 = vsub.f32 %v597_v54, %v607_v55  ;;  %v677_v20 = vmul.f32 %v1783_v48, %v1703_v53  ;;  %v687_v21 = vmul.f32 %v1790_v56, %v1706_v57 }
  0x79   : > { %v531_v26 = vadd.f32 %v529_v50, %v491_v7  ;;  %v649_v29 = vsub.f32 %v637_v11, %v647_v62  ;;  %v717_v30 = vmul.f32 %v1793_v58, %v1720_v0  ;;  %v727_v35 = vmul.f32 %v1796_v63, %v1723_v1 }
  0x7a   : > { %v730_v39 = vadd.f32 %v728_v27, %v690_v13  ;;  %v689_v41 = vsub.f32 %v677_v20, %v687_v21  ;;  %v576_v18 = vadd.f32 %v574_v61, %v1678_v40  ;;  %v614_v42 = vmul.f32 %v1663_v31, %v1668_v36 }
  0x7b   : > { %v571_v49 = vadd.f32 %v569_v8, %v531_v26  ;;  %v729_v54 = vsub.f32 %v717_v30, %v727_v35  ;;  %v652_v55 = vmul.f32 %v1674_v38, %v1690_v46  ;;  %v654_v50 = vmul.f32 %v1684_v44, %v1687_v45 }
  0x7c   : > { %740 = vst [vmem:[%s1818_s24] sm:$0xff] %v730_v39  ;;  %v578_v27 = vadd.f32 %v576_v18, %v538_v5  ;;  %v616_v7 = vadd.f32 %v614_v42, %v612_v6  ;;  %v692_v40 = vmul.f32 %v1697_v51, %v1706_v57  ;;  %v694_v31 = vmul.f32 %v1700_v52, %v1703_v53 }
  0x7d   : > { %v611_v61 = vadd.f32 %v609_v19, %v571_v49  ;;  %v656_v8 = vadd.f32 %v654_v50, %v652_v55  ;;  %v732_v38 = vmul.f32 %v1711_v59, %v1723_v1  ;;  %v734_v44 = vmul.f32 %v1714_v60, %v1720_v0 }
  0x7e   : > { %v618_v11 = vadd.f32 %v616_v7, %v578_v27  ;;  %v696_v62 = vadd.f32 %v694_v31, %v692_v40  ;;  %v453_v5 = vmul.f32 %v1726_v4, %v1624_v3  ;;  %v455_v51 = vmul.f32 %v1734_v12, %v1621_v2 }
  0x7f   : > { %v651_v6 = vadd.f32 %v649_v29, %v611_v61  ;;  %v736_v13 = vadd.f32 %v734_v44, %v732_v38  ;;  %v493_v52 = vmul.f32 %v1739_v14, %v1635_v10  ;;  %v495_v59 = vmul.f32 %v1742_v15, %v1632_v9 }
  0x80   : > { %v658_v60 = vadd.f32 %v656_v8, %v618_v11  ;;  %v457_v19 = vadd.f32 %v455_v51, %v453_v5  ;;  %v533_v20 = vmul.f32 %v1751_v22, %v1646_v17  ;;  %v535_v3 = vmul.f32 %v1754_v23, %v1643_v16 }
  0x81   : > { %v691_v2 = vadd.f32 %v689_v41, %v651_v6  ;;  %v497_v4 = vadd.f32 %v495_v59, %v493_v52  ;;  %v573_v10 = vmul.f32 %v1757_v24, %v1658_v28  ;;  %v575_v9 = vmul.f32 %v1764_v32, %v1655_v25 }
  0x82   : > { %v698_v12 = vadd.f32 %v696_v62, %v658_v60  ;;  %v537_v14 = vadd.f32 %v535_v3, %v533_v20  ;;  %v613_v17 = vmul.f32 %v1767_v33, %v1671_v37  ;;  %v615_v16 = vmul.f32 %v1770_v34, %v1668_v36 }
  0x83   : > { %v731_v28 = vadd.f32 %v729_v54, %v691_v2  ;;  %v499_v25 = vadd.f32 %v497_v4, %v457_v19  ;;  %v577_v15 = vadd.f32 %v575_v9, %v573_v10  ;;  %v653_v22 = vmul.f32 %v1777_v43, %v1690_v46 }
  0x84   : > { %v738_v37 = vadd.f32 %v736_v13, %v698_v12  ;;  %v655_v23 = vmul.f32 %v1780_v47, %v1687_v45  ;;  %v617_v24 = vadd.f32 %v615_v16, %v613_v17  ;;  %v693_v32 = vmul.f32 %v1783_v48, %v1706_v57 }
  0x85   : > { %741 = vst [vmem:[%s1818_s24 + $0x8] sm:$0xff] %v731_v28  ;;  %v539_v36 = vadd.f32 %v537_v14, %v499_v25  ;;  %v695_v33 = vmul.f32 %v1790_v56, %v1703_v53 }
  0x86   : > { %742 = vst [vmem:[%s1870_s17] sm:$0xff] %v738_v37 }
  0x87   : > { %1281 = shalt.err (!%p1278_p13)
}
  0x88   : > { %s1282_s9 = scalar_lea.hbm %s1858_s23, 256  ;;  %s1286_s13 = scalar_lea.hbm %s1965_s4, 512 }
  0x89   : > { %p1283_p12 = scmp.ne.s32.totalorder %s1858_s23, %s1282_s9  ;;  %p1287_p2 = scmp.lt.s32.totalorder %s1858_s23, %s1965_s4 }
  0x8a   : > { %p1288_p6 = scmp.lt.s32.totalorder %s1286_s13, %s1282_s9 }
  0x8b   : > { %p1284_p5 = pnand %p1283_p12, %p1483_p9 }
  0x8c   : > { %p1289_p8 = por %p1288_p6, %p1287_p2 }
  0x8d   : > { %p1285_p1 = pneg %p1284_p5 }
  0x8f   : > { %p1290_p0 = pnand %p1289_p8, %p1285_p1 }
  0x91   : > { %1293 = shalt.err (!%p1290_p0)
}
  0x92   : > { %s1395_s28 = smov 128   ;;  %s1396_s8 = smov 8   ;;  %v579_v45 = vadd.f32 %v577_v15, %v539_v36  ;;  %v657_v46 = vadd.f32 %v655_v23, %v653_v22  ;;  %v733_v53 = vmul.f32 %v1793_v58, %v1723_v1  ;;  %v735_v57 = vmul.f32 %v1796_v63, %v1720_v0 }
  0x93   : > { %1078 = dma.vmem_to_hbm [thread:$0]  (%p1483_p9), %s1843_s30, 256, %s1858_s23, %s745_s14, %s1395_s28, %s1395_s28, %s1396_s8   ;;  %v697_v43 = vadd.f32 %v695_v33, %v693_v32 }
  0x94   : > { %v619_v34 = vadd.f32 %v617_v24, %v579_v45  ;;  %s785_s1 = sshll.u32 %s1870_s17, 4  ;;  %v737_v48 = vadd.f32 %v735_v57, %v733_v53  ;;  %s1911_s29 = scalar_lea.hbm %s1966_s5, %s1068_s20  ;;  %s1904_s1 = int_to_ptr.vmem [resolvable:$true] %s785_s1 }
  0x95   : > { %s750_s0 = scalar_lea.sflag [#allocation12], %s1587_s7  ;;  %s1294_s23 = scalar_lea.vmem %s1904_s1, 256 }
  0x96   : > { %v659_v47 = vadd.f32 %v657_v46, %v619_v34  ;;  %p1295_p3 = scmp.ne.s32.totalorder %s1904_s1, %s1294_s23  ;;  %s1397_s14 = smov [#allocation11]  }
  0x97   : > { %s1298_s16 = sshll.u32 %s1397_s14, 4  ;;  %s1299_s16 = int_to_ptr.vmem [resolvable:$false] %s1298_s16 }
  0x98   : > { %v699_v56 = vadd.f32 %v697_v43, %v659_v47  ;;  %p1296_p4 = pnand %p1295_p3, %p1483_p9  ;;  %s1300_s15 = scalar_lea.vmem %s1299_s16, 512 }
  0x99   : > { %p1301_p10 = scmp.lt.s32.totalorder %s1904_s1, %s1299_s16  ;;  %p1302_p13 = scmp.lt.s32.totalorder %s1300_s15, %s1294_s23 }
  0x9a   : > { %v739_v21 = vadd.f32 %v737_v48, %v699_v56  ;;  %p1297_p7 = pneg %p1296_p4 }
  0x9b   : > { %p1303_p12 = por %p1302_p13, %p1301_p10 }
  0x9c   : > { %743 = vst [vmem:[%s1870_s17 + $0x8] sm:$0xff] %v739_v21 }
  0x9d   : > { %p1304_p5 = pnand %p1303_p12, %p1297_p7 }
  0x9f   : > { %1307 = shalt.err (!%p1304_p5)
}
  0xa0   : > { %s1308_s21 = scalar_lea.hbm %s1911_s29, 256  ;;  %s1312_s17 = scalar_lea.hbm %s1966_s5, 512 }
  0xa1   : > { %p1309_p1 = scmp.ne.s32.totalorder %s1911_s29, %s1308_s21  ;;  %p1313_p8 = scmp.lt.s32.totalorder %s1911_s29, %s1966_s5 }
  0xa2   : > { %p1314_p0 = scmp.lt.s32.totalorder %s1312_s17, %s1308_s21 }
  0xa3   : > { %p1310_p2 = pnand %p1309_p1, %p1483_p9 }
  0xa4   : > { %p1315_p3 = por %p1314_p0, %p1313_p8 }
  0xa5   : > { %p1311_p6 = pneg %p1310_p2 }
  0xa7   : > { %p1316_p4 = pnand %p1315_p3, %p1311_p6 }
  0xa9   : > { %1319 = shalt.err (!%p1316_p4)
}
  0xaa   : > { %1079 = dma.vmem_to_hbm [thread:$0]  (%p1483_p9), %s1904_s1, 256, %s1911_s29, %s750_s0, %s1395_s28, %s1395_s28, %s1396_s8  }
  0xab PF: > { %s1991_s11 = sld [smem:[#allocation19_spill]]  ;;  %s800_s12 = sand.u32 1, %s1366_s18  }
  0xac   : > { %s801_s13 = scalar_lea.sflag [#allocation4], %s800_s12 }
  0xb1   : > { %p1992_p7 = scmp.ge.s32.totalorder %s1991_s11, 2 }
  0xb3   : > { %p1096_p10 = pnand %p1992_p7, %p1490_p11 }
  0xb5   : > { %p1097_p13 = pneg %p1096_p10 }
  0xb7   : > { %1357 = dma.done.wait (%p1097_p13), %s801_s13, 256  }
  0xb8   : > { %1359 = vsyncadd (%p1097_p13), %s801_s13, 4294967040  ;;  %s810_s26 = scalar_lea.sflag [#allocation12], %s800_s12 }
  0xb9   : > { %1361 = dma.done.wait (%p1097_p13), %s810_s26, 256  }
  0xba   : > { %1363 = vsyncadd (%p1097_p13), %s810_s26, 4294967040  ;;  %s31_s23 = sadd.s32 1, %s1991_s11   ;;  %s1993_s6 = sld [smem:[#allocation18_spill]] }
  0xbb   : > { %p28_p12 = scmp.ge.s32.totalorder %s31_s23, 4   ;;  %s1994_s20 = sld [smem:[#allocation21_spill]] }
  0xbc   : > { %s1995_s10 = sld [smem:[#allocation20_spill]]  ;;  %s1996_s18 = smov %s1370_s19 }
  0xbd   : > { %s1998_s21 = smov %s1382_s22 }
  0xbe   :  { %30 = sbr.rel (!%p28_p12) target bundleno = 15 (0xf), region = 149 }
  0xc0   : > { %s1997_s19 = smov %s1993_s6 }
  0xc2   : > { %s1999_s22 = smov %s1995_s10 }
  0xc3   :  { %815 = vsyncpa [#allocation3], 1 }
  0xc4   :  { %817 = vsyncpa [#allocation3 + $0x1], 1 }
  0xc5   :  { %818 = vsyncpa [#allocation6], 1 }
  0xc6   :  { %820 = vsyncpa [#allocation6 + $0x1], 1 }
  0xc7   :  { %821 = vsyncpa [#allocation9], 1 }
  0xc8   :  { %823 = vsyncpa [#allocation9 + $0x1], 1 }
  0xc9   :  { %824 = vsyncpa [#allocation4], 1 }
  0xca   :  { %826 = vsyncpa [#allocation4 + $0x1], 1 }
  0xcb   :  { %827 = vsyncpa [#allocation12], 1 }
  0xcc   :  { %829 = vsyncpa [#allocation12 + $0x1], 1 }

</bundles_post_ra>
